<compile_context>
chip_gen: v7x
topology: tpu7x:2x2x1
jax: 0.10.0
libtpu: 0.0.40
codegen_flags: <defaults>
</compile_context>

<pallas_src>
import numpy as np
import jax
import jax.numpy as jnp
from jax.experimental import pallas as pl
from jax.experimental.pallas import tpu as pltpu

# ----------------------------- configuration ---------------------------------
N = 2            # batch
C_IN = 4         # in_channels  (!= 3 -> in1x1 is Identity, embed channels = C_IN)
C_OUT = 8        # out_channels
T_IN = 32        # input time length
V = 8            # number of skeleton vertices
NUM_SCALES = 2   # num_scales
WS = 3           # window_size
STRIDE = 2       # window_stride
DIL = 1          # window_dilation

C1 = C_IN                                   # embed_channels_out (gcn output channels)
VL = WS * V                                 # spatial-temporal graph size (= 24)
PAD = (WS + (WS - 1) * (DIL - 1) - 1) // 2
T_OUT = (T_IN + 2 * PAD - DIL * (WS - 1) - 1) // STRIDE + 1   # = 16
BN_EPS = 1e-5

ROWS_X = N * C_IN * T_OUT                   # 128  kernel-input rows  (n, c, t)
ROWS_H = N * C1 * T_OUT                     # 128  post-mlp rows      (n, o, t)
ROWS_Z = N * C_OUT * T_OUT                  # 256  kernel-output rows (n, oo, t)


# ----------------------- graph construction (numpy, __init__-time) -----------
def k_adjacency(A, k, with_self=False, self_factor=1.0):
    I = np.eye(len(A), dtype=A.dtype)
    if k == 0:
        return I
    Ak = (np.minimum(np.linalg.matrix_power(A + I, k), 1)
          - np.minimum(np.linalg.matrix_power(A + I, k - 1), 1))
    if with_self:
        Ak = Ak + self_factor * I
    return Ak


def normalize_adjacency_matrix(A):
    node_degrees = A.sum(-1)
    degs_inv_sqrt = np.power(node_degrees, -0.5)
    D = np.eye(len(node_degrees)) * degs_inv_sqrt
    return (D @ A @ D).astype(np.float32)


def build_spatial_temporal_graph(A_binary, window_size):
    A_with_I = A_binary + np.eye(len(A_binary), dtype=A_binary.dtype)
    return np.tile(A_with_I, (window_size, window_size)).copy()


# ----------------------------- JAX glue ---------------------------------------
def unfold_windows_slices(x):
    """UnfoldTemporalWindows via pad + WS strided slices (no XLA gather).

    (N, C, T_in, V) -> (N, C, T_out, WS*V), window index major over V.
    """
    n, c, _, v = x.shape
    xp = jnp.pad(x, ((0, 0), (0, 0), (PAD, PAD), (0, 0)))
    wins = []
    for w in range(WS):
        start = w * DIL
        limit = start + (T_OUT - 1) * STRIDE + 1
        wins.append(jax.lax.slice(xp, (0, 0, start, 0), (n, c, limit, v),
                                  (1, 1, STRIDE, 1)))          # (N, C, T_out, V)
    xu = jnp.stack(wins, axis=3)                               # (N, C, T_out, WS, V)
    return xu.reshape(n, c, T_OUT, WS * v)


def unfold_temporal_windows_gather(x, ws, stride, dilation):
    """Reference-only gather version of UnfoldTemporalWindows."""
    n, c, t, v = x.shape
    pad = (ws + (ws - 1) * (dilation - 1) - 1) // 2
    xp = jnp.pad(x, ((0, 0), (0, 0), (pad, pad), (0, 0)))
    t_out = (t + 2 * pad - dilation * (ws - 1) - 1) // stride + 1
    idx = jnp.arange(t_out)[:, None] * stride + jnp.arange(ws)[None, :] * dilation
    g = xp[:, :, idx, :]                                       # (N, C, T_out, ws, V)
    return g.reshape(n, c, t_out, ws * v), t_out


# ----------------------------- fused Pallas kernel -----------------------------
def _ms_g3d_fused_kernel(x2_ref, acat_ref, m1_ref, m2_ref, shift_ref, o_ref):
    """Whole MS_G3D forward (post-unfold) for the whole batch in one invocation.

    x2_ref:    (ROWS_X, VL)            rows = (n, c, t), lanes = source vertex u'
    acat_ref:  (VL, NUM_SCALES*VL)     acat[u', s*VL + u] = (A_scales + A_res)[s, u, u']
    m1_ref:    (NUM_SCALES, ROWS_H, ROWS_X)  block-diag (over n,t) mlp weights, BN1 scale folded
    m2_ref:    (WS, ROWS_Z, ROWS_H)          block-diag (over n,t) out_conv weights, BN2 scale folded
    shift_ref: (ROWS_H + ROWS_Z, 1)    [BN1 shift per (n,o,t) row ; BN2 shift per (n,oo,t) row]
    o_ref:     (ROWS_Z, V)             rows = (n, oo, t), lanes = vertex v  (reshape-only output)
    """
    # Stage 1: multi-scale graph aggregation (contract u' -> lanes (s, u)).
    agg = jnp.dot(x2_ref[...], acat_ref[...],
                  preferred_element_type=jnp.float32)                   # (128, 48)

    # Stage 2: gcn mlp (1x1 conv, BN scale pre-folded) -- one matmul per scale.
    h = jnp.dot(m1_ref[0], agg[:, 0:VL], preferred_element_type=jnp.float32)
    for s in range(1, NUM_SCALES):
        h = h + jnp.dot(m1_ref[s], agg[:, s * VL:(s + 1) * VL],
                        preferred_element_type=jnp.float32)             # (128, 24)
    h = jnp.maximum(h + shift_ref[0:ROWS_H, :], 0.0)                    # BN shift + ReLU

    # Stage 3: out_conv over the window dim (BN scale pre-folded) -- one matmul per window.
    z = jnp.dot(m2_ref[0], h[:, 0:V], preferred_element_type=jnp.float32)
    for w in range(1, WS):
        z = z + jnp.dot(m2_ref[w], h[:, w * V:(w + 1) * V],
                        preferred_element_type=jnp.float32)             # (256, 8)
    o_ref[...] = (z + shift_ref[ROWS_H:ROWS_H + ROWS_Z, :]).astype(o_ref.dtype)


# ----------------------------- wrapper -----------------------------------------
def ms_g3d_forward(x, kp):
    xu = unfold_windows_slices(x)                     # (N, C, T_out, VL)
    x2 = xu.reshape(ROWS_X, VL)                       # rows (n, c, t), lanes u'

    out = pl.pallas_call(
        _ms_g3d_fused_kernel,
        out_shape=jax.ShapeDtypeStruct((ROWS_Z, V), jnp.float32),
        grid=(1,),
        in_specs=[
            pl.BlockSpec((ROWS_X, VL), lambda i: (0, 0)),
            pl.BlockSpec((VL, NUM_SCALES * VL), lambda i: (0, 0)),
            pl.BlockSpec((NUM_SCALES, ROWS_H, ROWS_X), lambda i: (0, 0, 0)),
            pl.BlockSpec((WS, ROWS_Z, ROWS_H), lambda i: (0, 0, 0)),
            pl.BlockSpec((ROWS_H + ROWS_Z, 1), lambda i: (0, 0)),
        ],
        out_specs=pl.BlockSpec((ROWS_Z, V), lambda i: (0, 0)),
        compiler_params=pltpu.CompilerParams(dimension_semantics=("arbitrary",)),
    )(x2, kp["acat"], kp["m1"], kp["m2"], kp["shift"])

    return out.reshape(N, C_OUT, T_OUT, V)            # pure (bitcast) reshape, no transpose


# ----------------------- parameter folding (one-time, outside jit) --------------
def fold_params(params):
    """Pre-fold A_res + BN scales into the weights and kron-expand the channel mixers."""
    A_eff = params["A_scales"] + params["A_res"]                        # (S, VL, VL)
    acat = jnp.transpose(A_eff, (2, 0, 1)).reshape(VL, NUM_SCALES * VL)

    w1s = params["sc1"][:, None] * params["w1"]                         # (C1, S*C)
    w2s = params["sc2"][:, None, None] * params["w2"]                   # (C_OUT, C1, WS)

    i_n = jnp.eye(N, dtype=jnp.float32)
    i_t = jnp.eye(T_OUT, dtype=jnp.float32)
    # M1[s][(n,o,t),(n',c,t')] = d[n,n'] d[t,t'] * sc1[o]*w1[o, s*C+c]
    m1 = jnp.stack([jnp.kron(i_n, jnp.kron(w1s[:, s * C_IN:(s + 1) * C_IN], i_t))
                    for s in range(NUM_SCALES)])                        # (S, 128, 128)
    # M2[w][(n,oo,t),(n',o,t')] = d[n,n'] d[t,t'] * sc2[oo]*w2[oo, o, w]
    m2 = jnp.stack([jnp.kron(i_n, jnp.kron(w2s[:, :, w], i_t))
                    for w in range(WS)])                                # (WS, 256, 128)

    shift = jnp.concatenate([jnp.tile(jnp.repeat(params["sh1"], T_OUT), N),
                             jnp.tile(jnp.repeat(params["sh2"], T_OUT), N)])[:, None]
    return dict(acat=acat, m1=m1, m2=m2, shift=shift)


# ----------------------------- parameter init ----------------------------------
def init_params(key):
    # small synthetic skeleton graph (8 vertices)
    A_binary = np.zeros((V, V), np.float32)
    for i, j in [(0, 1), (1, 2), (2, 3), (3, 4), (4, 5), (5, 6), (6, 7), (1, 6), (2, 5)]:
        A_binary[i, j] = 1.0
        A_binary[j, i] = 1.0

    A_large = build_spatial_temporal_graph(A_binary, WS)                    # (VL, VL)
    A_scales = np.concatenate(
        [normalize_adjacency_matrix(k_adjacency(A_large, k, with_self=True))
         for k in range(NUM_SCALES)])                                       # (S*VL, VL)
    A_scales = jnp.asarray(A_scales.reshape(NUM_SCALES, VL, VL), jnp.float32)

    k = jax.random.split(key, 13)
    A_res = jax.random.uniform(k[0], (NUM_SCALES, VL, VL), jnp.float32, -1e-6, 1e-6)

    # gcn mlp: Conv2d(S*C_IN -> C1, kernel 1) + BatchNorm2d(C1)
    w1 = 0.1 * jax.random.normal(k[1], (C1, NUM_SCALES * C_IN), jnp.float32)
    b1 = 0.1 * jax.random.normal(k[2], (C1,), jnp.float32)
    g1 = jax.random.uniform(k[3], (C1,), jnp.float32, 0.5, 1.5)
    beta1 = 0.1 * jax.random.normal(k[4], (C1,), jnp.float32)
    m1 = 0.1 * jax.random.normal(k[5], (C1,), jnp.float32)
    v1 = jax.random.uniform(k[6], (C1,), jnp.float32, 0.5, 1.5)
    sc1 = g1 / jnp.sqrt(v1 + BN_EPS)
    sh1 = (b1 - m1) * sc1 + beta1

    # out_conv: Conv3d(C1 -> C_OUT, kernel (1,WS,1)) + BatchNorm2d(C_OUT)
    w2 = 0.1 * jax.random.normal(k[7], (C_OUT, C1, WS), jnp.float32)
    b2 = 0.1 * jax.random.normal(k[8], (C_OUT,), jnp.float32)
    g2 = jax.random.uniform(k[9], (C_OUT,), jnp.float32, 0.5, 1.5)
    beta2 = 0.1 * jax.random.normal(k[10], (C_OUT,), jnp.float32)
    m2 = 0.1 * jax.random.normal(k[11], (C_OUT,), jnp.float32)
    v2 = jax.random.uniform(k[12], (C_OUT,), jnp.float32, 0.5, 1.5)
    sc2 = g2 / jnp.sqrt(v2 + BN_EPS)
    sh2 = (b2 - m2) * sc2 + beta2

    return dict(A_scales=A_scales, A_res=A_res, w1=w1, sc1=sc1, sh1=sh1,
                w2=w2, sc2=sc2, sh2=sh2)


# ----------------------------- pure-JAX reference ------------------------------
def reference_forward(x, params):
    n, c_in, _, v = x.shape
    hi = jax.lax.Precision.HIGHEST
    xu, t_out = unfold_temporal_windows_gather(x, WS, STRIDE, DIL)          # (N,C,T_out,VL)
    A = (params["A_scales"] + params["A_res"]).reshape(NUM_SCALES * VL, VL)
    agg = jnp.einsum('vu,nctu->nctv', A, xu, precision=hi)                  # (N,C,T_out,S*VL)
    agg = agg.reshape(n, c_in, t_out, NUM_SCALES, VL)
    agg = jnp.transpose(agg, (0, 3, 1, 2, 4)).reshape(n, NUM_SCALES * c_in, t_out, VL)
    h = jnp.einsum('oc,nctv->notv', params["w1"], agg, precision=hi)
    h = h * params["sc1"][None, :, None, None] + params["sh1"][None, :, None, None]
    h = jnp.maximum(h, 0.0)
    h5 = h.reshape(n, C1, t_out, WS, v)
    z = jnp.einsum('ocw,nctwv->notv', params["w2"], h5, precision=hi)
    z = z * params["sc2"][None, :, None, None] + params["sh2"][None, :, None, None]
    return z


# ----------------------------- main ---------------------------------------------
if __name__ == "__main__":
    key = jax.random.PRNGKey(0)
    pkey, xkey = jax.random.split(key)
    params = init_params(pkey)
    kparams = fold_params(params)          # one-time weight folding / expansion

    x = jax.random.normal(xkey, (N, C_IN, T_IN, V), jnp.float32)

    fwd = jax.jit(lambda xx: ms_g3d_forward(xx, kparams))
    out = jax.block_until_ready(fwd(x))

    assert out.shape == (N, C_OUT, T_OUT, V), out.shape
    ref = reference_forward(x, params)
    max_err = float(jnp.max(jnp.abs(out - ref)))
    assert max_err < 1e-3, f"mismatch vs reference: {max_err}"
    print("KERNEL_OK")
</pallas_src>

<mosaic_0001>
module attributes {stable_mosaic.version = 11 : i64} {
  func.func @_ms_g3d_fused_kernel(%arg0: i32, %arg1: memref<128x24xf32, #tpu.memory_space<vmem>>, %arg2: memref<24x48xf32, #tpu.memory_space<vmem>>, %arg3: memref<2x128x128xf32, #tpu.memory_space<vmem>>, %arg4: memref<3x256x128xf32, #tpu.memory_space<vmem>>, %arg5: memref<384x1xf32, #tpu.memory_space<vmem>>, %arg6: memref<256x8xf32, #tpu.memory_space<vmem>>) attributes {dimension_semantics = [#tpu.dimension_semantics<arbitrary>], iteration_bounds = array<i64: 1>, scalar_prefetch = 0 : i64, scratch_operands = 0 : i64, tpu.core_type = #tpu.core_type<tc>, window_params = [{pipeline_mode = #tpu.pipeline_mode<synchronous>, transform_indices = @transform_0, window_bounds = array<i64: 128, 24>}, {pipeline_mode = #tpu.pipeline_mode<synchronous>, transform_indices = @transform_1, window_bounds = array<i64: 24, 48>}, {pipeline_mode = #tpu.pipeline_mode<synchronous>, transform_indices = @transform_2, window_bounds = array<i64: 2, 128, 128>}, {pipeline_mode = #tpu.pipeline_mode<synchronous>, transform_indices = @transform_3, window_bounds = array<i64: 3, 256, 128>}, {pipeline_mode = #tpu.pipeline_mode<synchronous>, transform_indices = @transform_4, window_bounds = array<i64: 384, 1>}, {pipeline_mode = #tpu.pipeline_mode<synchronous>, transform_indices = @transform_5, window_bounds = array<i64: 256, 8>}]} {
    %c0 = arith.constant 0 : index
    %c0_0 = arith.constant 0 : index
    %0 = vector.load %arg1[%c0, %c0_0] : memref<128x24xf32, #tpu.memory_space<vmem>>, vector<128x24xf32>
    %c0_1 = arith.constant 0 : index
    %c0_2 = arith.constant 0 : index
    %1 = vector.load %arg2[%c0_1, %c0_2] : memref<24x48xf32, #tpu.memory_space<vmem>>, vector<24x48xf32>
    %cst = arith.constant dense<0.000000e+00> : vector<128x48xf32>
    %2 = tpu.matmul %0, %1, %cst {dimension_numbers = #tpu.dot_dimension_numbers<[1], [0], [0], [1], [0, 0, 1, 1], [], []>} : vector<128x24xf32>, vector<24x48xf32>, vector<128x48xf32> -> vector<128x48xf32>
    %c0_3 = arith.constant 0 : index
    %c0_4 = arith.constant 0 : index
    %c0_5 = arith.constant 0 : index
    %3 = vector.load %arg3[%c0_3, %c0_4, %c0_5] : memref<2x128x128xf32, #tpu.memory_space<vmem>>, vector<1x128x128xf32>
    %4 = vector.shape_cast %3 : vector<1x128x128xf32> to vector<128x128xf32>
    %5 = vector.extract_strided_slice %2 {offsets = [0, 0], sizes = [128, 24], strides = [1, 1]} : vector<128x48xf32> to vector<128x24xf32>
    %cst_6 = arith.constant dense<0.000000e+00> : vector<128x24xf32>
    %6 = tpu.matmul %4, %5, %cst_6 {dimension_numbers = #tpu.dot_dimension_numbers<[1], [0], [0], [1], [0, 0, 1, 1], [], []>} : vector<128x128xf32>, vector<128x24xf32>, vector<128x24xf32> -> vector<128x24xf32>
    %c1 = arith.constant 1 : index
    %c0_7 = arith.constant 0 : index
    %c0_8 = arith.constant 0 : index
    %7 = vector.load %arg3[%c1, %c0_7, %c0_8] : memref<2x128x128xf32, #tpu.memory_space<vmem>>, vector<1x128x128xf32>
    %8 = vector.shape_cast %7 : vector<1x128x128xf32> to vector<128x128xf32>
    %9 = vector.extract_strided_slice %2 {offsets = [0, 24], sizes = [128, 24], strides = [1, 1]} : vector<128x48xf32> to vector<128x24xf32>
    %cst_9 = arith.constant dense<0.000000e+00> : vector<128x24xf32>
    %10 = tpu.matmul %8, %9, %cst_9 {dimension_numbers = #tpu.dot_dimension_numbers<[1], [0], [0], [1], [0, 0, 1, 1], [], []>} : vector<128x128xf32>, vector<128x24xf32>, vector<128x24xf32> -> vector<128x24xf32>
    %11 = arith.addf %6, %10 : vector<128x24xf32>
    %c0_10 = arith.constant 0 : index
    %c0_11 = arith.constant 0 : index
    %12 = vector.load %arg5[%c0_10, %c0_11] : memref<384x1xf32, #tpu.memory_space<vmem>>, vector<128x1xf32>
    %13 = vector.broadcast %12 : vector<128x1xf32> to vector<128x24xf32>
    %14 = arith.addf %11, %13 : vector<128x24xf32>
    %cst_12 = arith.constant 0.000000e+00 : f32
    %15 = vector.broadcast %cst_12 : f32 to vector<128x24xf32>
    %16 = arith.maximumf %14, %15 : vector<128x24xf32>
    %c0_13 = arith.constant 0 : index
    %c0_14 = arith.constant 0 : index
    %c0_15 = arith.constant 0 : index
    %17 = vector.load %arg4[%c0_13, %c0_14, %c0_15] : memref<3x256x128xf32, #tpu.memory_space<vmem>>, vector<1x256x128xf32>
    %18 = vector.shape_cast %17 : vector<1x256x128xf32> to vector<256x128xf32>
    %19 = vector.extract_strided_slice %16 {offsets = [0, 0], sizes = [128, 8], strides = [1, 1]} : vector<128x24xf32> to vector<128x8xf32>
    %cst_16 = arith.constant dense<0.000000e+00> : vector<256x8xf32>
    %20 = tpu.matmul %18, %19, %cst_16 {dimension_numbers = #tpu.dot_dimension_numbers<[1], [0], [0], [1], [0, 0, 1, 1], [], []>} : vector<256x128xf32>, vector<128x8xf32>, vector<256x8xf32> -> vector<256x8xf32>
    %c1_17 = arith.constant 1 : index
    %c0_18 = arith.constant 0 : index
    %c0_19 = arith.constant 0 : index
    %21 = vector.load %arg4[%c1_17, %c0_18, %c0_19] : memref<3x256x128xf32, #tpu.memory_space<vmem>>, vector<1x256x128xf32>
    %22 = vector.shape_cast %21 : vector<1x256x128xf32> to vector<256x128xf32>
    %23 = vector.extract_strided_slice %16 {offsets = [0, 8], sizes = [128, 8], strides = [1, 1]} : vector<128x24xf32> to vector<128x8xf32>
    %cst_20 = arith.constant dense<0.000000e+00> : vector<256x8xf32>
    %24 = tpu.matmul %22, %23, %cst_20 {dimension_numbers = #tpu.dot_dimension_numbers<[1], [0], [0], [1], [0, 0, 1, 1], [], []>} : vector<256x128xf32>, vector<128x8xf32>, vector<256x8xf32> -> vector<256x8xf32>
    %25 = arith.addf %20, %24 : vector<256x8xf32>
    %c2 = arith.constant 2 : index
    %c0_21 = arith.constant 0 : index
    %c0_22 = arith.constant 0 : index
    %26 = vector.load %arg4[%c2, %c0_21, %c0_22] : memref<3x256x128xf32, #tpu.memory_space<vmem>>, vector<1x256x128xf32>
    %27 = vector.shape_cast %26 : vector<1x256x128xf32> to vector<256x128xf32>
    %28 = vector.extract_strided_slice %16 {offsets = [0, 16], sizes = [128, 8], strides = [1, 1]} : vector<128x24xf32> to vector<128x8xf32>
    %cst_23 = arith.constant dense<0.000000e+00> : vector<256x8xf32>
    %29 = tpu.matmul %27, %28, %cst_23 {dimension_numbers = #tpu.dot_dimension_numbers<[1], [0], [0], [1], [0, 0, 1, 1], [], []>} : vector<256x128xf32>, vector<128x8xf32>, vector<256x8xf32> -> vector<256x8xf32>
    %30 = arith.addf %25, %29 : vector<256x8xf32>
    %c128 = arith.constant 128 : index
    %c0_24 = arith.constant 0 : index
    %31 = vector.load %arg5[%c128, %c0_24] : memref<384x1xf32, #tpu.memory_space<vmem>>, vector<256x1xf32>
    %32 = vector.broadcast %31 : vector<256x1xf32> to vector<256x8xf32>
    %33 = arith.addf %30, %32 : vector<256x8xf32>
    %c0_25 = arith.constant 0 : index
    %c0_26 = arith.constant 0 : index
    %34 = vector.load %arg6[%c0_25, %c0_26] : memref<256x8xf32, #tpu.memory_space<vmem>>, vector<256x8xf32>
    tpu.vector_store %arg6[%c0_25, %c0_26], %33 {strides = array<i32>} : memref<256x8xf32, #tpu.memory_space<vmem>>, vector<256x8xf32>,
    return
  }
  func.func @transform_0(%arg0: i32) -> (i32, i32) {
    %c0_i32 = arith.constant 0 : i32
    %c0_i32_0 = arith.constant 0 : i32
    %c0_i32_1 = arith.constant 0 : i32
    return %c0_i32, %c0_i32_0 : i32, i32
  }
  func.func @transform_1(%arg0: i32) -> (i32, i32) {
    %c0_i32 = arith.constant 0 : i32
    %c0_i32_0 = arith.constant 0 : i32
    %c0_i32_1 = arith.constant 0 : i32
    return %c0_i32, %c0_i32_0 : i32, i32
  }
  func.func @transform_2(%arg0: i32) -> (i32, i32, i32) {
    %c0_i32 = arith.constant 0 : i32
    %c0_i32_0 = arith.constant 0 : i32
    %c0_i32_1 = arith.constant 0 : i32
    %c0_i32_2 = arith.constant 0 : i32
    return %c0_i32, %c0_i32_0, %c0_i32_1 : i32, i32, i32
  }
  func.func @transform_3(%arg0: i32) -> (i32, i32, i32) {
    %c0_i32 = arith.constant 0 : i32
    %c0_i32_0 = arith.constant 0 : i32
    %c0_i32_1 = arith.constant 0 : i32
    %c0_i32_2 = arith.constant 0 : i32
    return %c0_i32, %c0_i32_0, %c0_i32_1 : i32, i32, i32
  }
  func.func @transform_4(%arg0: i32) -> (i32, i32) {
    %c0_i32 = arith.constant 0 : i32
    %c0_i32_0 = arith.constant 0 : i32
    %c0_i32_1 = arith.constant 0 : i32
    return %c0_i32, %c0_i32_0 : i32, i32
  }
  func.func @transform_5(%arg0: i32) -> (i32, i32) {
    %c0_i32 = arith.constant 0 : i32
    %c0_i32_0 = arith.constant 0 : i32
    %c0_i32_1 = arith.constant 0 : i32
    return %c0_i32, %c0_i32_0 : i32, i32
  }
}

</mosaic_0001>

<bundles_post_ra>
// kernel: _lambda_.1
= control target key start
LH: loop header
LB: loop body
LE: loop exit
PB: predicated region body
PF: predicated region fallthrough
CT: control target
= control target key end

     0   :  { %vm39_vm0 = vcmask 195584   ;;  %s3001_s30 = smov 104   ;;  %v3002_v53 = vmov 0   ;;  %s3004_s21 = smov 120   ;;  %vm1889_vm1 = vcmask 64512   ;;  %s3850_s1 = inlined_call_operand.vmem [shape: f32[24,48], index: 1, kind: input, shape index: {}]   ;;  %s3851_s0 = inlined_call_operand.vmem [shape: f32[128,24], index: 0, kind: input, shape index: {}]   ;;  %s3852_s2 = inlined_call_operand.vmem [shape: f32[2,128,128], index: 2, kind: input, shape index: {}]   ;;  %s3853_s4 = inlined_call_operand.vmem [shape: f32[384,1], index: 4, kind: input, shape index: {}]   ;;  %s3854_s3 = inlined_call_operand.vmem [shape: f32[3,256,128], index: 3, kind: input, shape index: {}]   ;;  %s3855_s5 = inlined_call_operand.vmem [shape: f32[256,8], index: 5, kind: output, shape index: {}]  }
   0x1   :  { %v36_v0 = vld [vmem:[%s3850_s1] sm:$0xff]  ;;  %v37_v1 = vld [vmem:[%s3850_s1 + $0x8] sm:$0xff]  ;;  %v38_v4 = vld [vmem:[%s3850_s1 + $0x10] sm:$0xff]  ;;  %2920 = vset.pattern.permute.xlu1 %v3002_v53  ;;  %2919 = vset.pattern.permute.xlu0 %v3002_v53 }
   0x2   :  { %v2631_v2 = vpack.c.bf16 %v37_v1, %v36_v0  ;;  %v20_v3 = vld [vmem:[%s3851_s0] sm:$0xff]  ;;  %v21_v5 = vld [vmem:[%s3851_s0 + $0x8] sm:$0xff]  ;;  %v22_v6 = vld [vmem:[%s3851_s0 + $0x10] sm:$0xff] }
   0x3   :  { %2255 = vmatprep.mubr.msk.f32.mxu0 %vm39_vm0, %v20_v3  ;;  %v23_v7 = vld [vmem:[%s3851_s0 + $0x18] sm:$0xff]  ;;  %v24_v8 = vld [vmem:[%s3851_s0 + $0x20] sm:$0xff]  ;;  %v25_v9 = vld [vmem:[%s3851_s0 + $0x28] sm:$0xff] }
   0x4   :  { %2632 = vmatprep.subr.bf16.mxu0 %v2631_v2  ;;  %v26_v10 = vld [vmem:[%s3851_s0 + $0x30] sm:$0xff]  ;;  %v27_v11 = vld [vmem:[%s3851_s0 + $0x38] sm:$0xff]  ;;  %v28_v12 = vld [vmem:[%s3851_s0 + $0x40] sm:$0xff] }
   0x5   :  { %2634 = vmatpush3.bf16.msra.mxu0 %v2631_v2  ;;  %v29_v13 = vld [vmem:[%s3851_s0 + $0x48] sm:$0xff]  ;;  %v30_v14 = vld [vmem:[%s3851_s0 + $0x50] sm:$0xff]  ;;  %v31_v15 = vld [vmem:[%s3851_s0 + $0x58] sm:$0xff] }
   0x6   :  { %2253 = vmatprep.subr.mxu0 %v38_v4  ;;  %v32_v16 = vld [vmem:[%s3851_s0 + $0x60] sm:$0xff]  ;;  %v33_v17 = vld [vmem:[%s3851_s0 + $0x68] sm:$0xff]  ;;  %v34_v18 = vld [vmem:[%s3851_s0 + $0x70] sm:$0xff] }
   0x7   :  { %v35_v19 = vld [vmem:[%s3851_s0 + $0x78] sm:$0xff]  ;;  %v1942_v46 = vld [vmem:[%s3852_s2 + $0x80] sm:$0xff]  ;;  %v621_v55 = vld [vmem:[%s3853_s4 + $0x8] sm:$0xff] }
   0x8   :  { %2311 = vmatprep.mubr.f32.mxu1 %v1942_v46  ;;  %v620_v54 = vld [vmem:[%s3853_s4] sm:$0xff]  ;;  %v623_v56 = vld [vmem:[%s3853_s4 + $0x18] sm:$0xff]  ;;  %v622_v57 = vld [vmem:[%s3853_s4 + $0x10] sm:$0xff] }
   0x9   :  { %2254 = vmatpush3.msra.mxu0 %v38_v4  ;;  %v625_v58 = vld [vmem:[%s3853_s4 + $0x28] sm:$0xff]  ;;  %v624_v59 = vld [vmem:[%s3853_s4 + $0x20] sm:$0xff]  ;;  %v627_v60 = vld [vmem:[%s3853_s4 + $0x38] sm:$0xff] }
   0xa   :  { %2256 = vmatmul.mubr.msk.f32.vlgmr.msra.gmra.mrb[0].mxu0 %vm39_vm0, %v21_v5  ;;  %v626_v61 = vld [vmem:[%s3853_s4 + $0x30] sm:$0xff]  ;;  %v629_v62 = vld [vmem:[%s3853_s4 + $0x48] sm:$0xff]  ;;  %v628_v63 = vld [vmem:[%s3853_s4 + $0x40] sm:$0xff] }
   0xb   :  { %2258 = vmatprep.mubr.msk.f32.mxu0 %vm39_vm0, %v22_v6  ;;  %v631_v0 = vld [vmem:[%s3853_s4 + $0x58] sm:$0xff]  ;;  %v630_v1 = vld [vmem:[%s3853_s4 + $0x50] sm:$0xff]  ;;  %v633_v2 = vld [vmem:[%s3853_s4 + $0x68] sm:$0xff] }
   0xc   :  { %v632_v3 = vld [vmem:[%s3853_s4 + $0x60] sm:$0xff]  ;;  %v635_v4 = vld [vmem:[%s3853_s4 + $0x78] sm:$0xff]  ;;  %v634_v5 = vld [vmem:[%s3853_s4 + $0x70] sm:$0xff] }
   0xd   :  { %v1945_v46 = vld [vmem:[%s3852_s2 + $0x98] sm:$0xff] }
   0xe   :  { %2259 = vmatmul.mubr.msk.f32.gmra.mrb[2].mxu0 %vm39_vm0, %v23_v7  ;;  %v1953_v53 = vld [vmem:[%s3852_s2 + $0xd8] sm:$0xff] }
   0xf   :  { %2261 = vmatprep.mubr.msk.f32.mxu0 %vm39_vm0, %v24_v8 }
  0x12   :  { %2262 = vmatmul.mubr.msk.f32.gmra.mrb[4].mxu0 %vm39_vm0, %v25_v9 }
  0x13   :  { %2264 = vmatprep.mubr.msk.f32.mxu0 %vm39_vm0, %v26_v10 }
  0x16   :  { %2265 = vmatmul.mubr.msk.f32.gmra.mrb[6].mxu0 %vm39_vm0, %v27_v11 }
  0x17   :  { %2267 = vmatprep.mubr.msk.f32.mxu0 %vm39_vm0, %v28_v12 }
  0x1a   :  { %2268 = vmatmul.mubr.msk.f32.gmra.mrb[8].mxu0 %vm39_vm0, %v29_v13 }
  0x1b   :  { %2270 = vmatprep.mubr.msk.f32.mxu0 %vm39_vm0, %v30_v14 }
  0x1e   :  { %2271 = vmatmul.mubr.msk.f32.gmra.mrb[10].mxu0 %vm39_vm0, %v31_v15 }
  0x1f   :  { %2273 = vmatprep.mubr.msk.f32.mxu0 %vm39_vm0, %v32_v16 }
  0x22   :  { %2274 = vmatmul.mubr.msk.f32.gmra.mrb[12].mxu0 %vm39_vm0, %v33_v17 }
  0x23   :  { %2276 = vmatprep.mubr.msk.f32.mxu0 %vm39_vm0, %v34_v18 }
  0x26   :  { %2277 = vmatmul.mubr.msk.f32.gmra.mrb[14].mxu0 %vm39_vm0, %v35_v19 }
  0xdd   :  { %v2257_v20 = vpop.f32.mrb[0].mxu0 }
  0xde   :  { %v154_v21 = vpop.f32.mrb[1].mxu0 }
  0xdf   :  { %v3108_v22 = vpack.c.bf16 %v2257_v20, %v154_v21  ;;  %v2879_v23 = vpack.i.bf16 %v2257_v20, %v154_v21 }
  0xe1   :  { %2880 = vrot.lane.b32.xlu0 %v2879_v23, %s3001_s30  ;;  %v2260_v24 = vpop.f32.mrb[2].mxu0 }
  0xe2   :  { %v164_v25 = vpop.f32.mrb[3].mxu0 }
  0xe3   :  { %v2884_v26 = vpack.i.bf16 %v2260_v24, %v164_v25  ;;  %v3111_v27 = vpack.c.bf16 %v2260_v24, %v164_v25 }
  0xe5   :  { %2885 = vrot.lane.b32.xlu0 %v2884_v26, %s3001_s30  ;;  %v2263_v28 = vpop.f32.mrb[4].mxu0 }
  0xe6   :  { %v174_v29 = vpop.f32.mrb[5].mxu0 }
  0xe7   :  { %v3114_v30 = vpack.c.bf16 %v2263_v28, %v174_v29  ;;  %v2889_v31 = vpack.i.bf16 %v2263_v28, %v174_v29 }
  0xe9   :  { %2890 = vrot.lane.b32.xlu1 %v2889_v31, %s3001_s30  ;;  %v2266_v32 = vpop.f32.mrb[6].mxu0 }
  0xea   :  { %v184_v33 = vpop.f32.mrb[7].mxu0 }
  0xeb   :  { %v2894_v34 = vpack.i.bf16 %v2266_v32, %v184_v33  ;;  %v3117_v35 = vpack.c.bf16 %v2266_v32, %v184_v33 }
  0xed   :  { %2895 = vrot.lane.b32.xlu1 %v2894_v34, %s3001_s30  ;;  %v2269_v36 = vpop.f32.mrb[8].mxu0 }
  0xee   :  { %v194_v37 = vpop.f32.mrb[9].mxu0 }
  0xef   :  { %v2899_v38 = vpack.i.bf16 %v2269_v36, %v194_v37  ;;  %v3120_v39 = vpack.c.bf16 %v2269_v36, %v194_v37 }
  0xf1   :  { %2900 = vrot.lane.b32.xlu0 %v2899_v38, %s3001_s30  ;;  %v2272_v40 = vpop.f32.mrb[10].mxu0 }
  0xf2   :  { %v204_v41 = vpop.f32.mrb[11].mxu0 }
  0xf3   :  { %v2904_v42 = vpack.i.bf16 %v2272_v40, %v204_v41  ;;  %v3123_v43 = vpack.c.bf16 %v2272_v40, %v204_v41 }
  0xf5   :  { %2905 = vrot.lane.b32.xlu1 %v2904_v42, %s3001_s30  ;;  %v2275_v44 = vpop.f32.mrb[12].mxu0 }
  0xf6   :  { %v214_v45 = vpop.f32.mrb[13].mxu0 }
  0xf7   :  { %v2909_v47 = vpack.i.bf16 %v2275_v44, %v214_v45  ;;  %v3129_v48 = vpack.c.bf16 %v2275_v44, %v214_v45  ;;  %v1943_v44 = vld [vmem:[%s3852_s2 + $0x88] sm:$0xff]  ;;  %v1944_v45 = vld [vmem:[%s3852_s2 + $0x90] sm:$0xff] }
  0xf9   :  { %2910 = vrot.lane.b32.xlu0 %v2909_v47, %s3001_s30  ;;  %v2278_v49 = vpop.f32.mrb[14].mxu0  ;;  %v1946_v47 = vld [vmem:[%s3852_s2 + $0xa0] sm:$0xff] }
  0xfa   :  { %v224_v50 = vpop.f32.mrb[15].mxu0 }
  0xfb   :  { %v2914_v51 = vpack.i.bf16 %v2278_v49, %v224_v50  ;;  %v3132_v52 = vpack.c.bf16 %v2278_v49, %v224_v50  ;;  %v1947_v49 = vld [vmem:[%s3852_s2 + $0xa8] sm:$0xff]  ;;  %v1949_v50 = vld [vmem:[%s3852_s2 + $0xb8] sm:$0xff] }
  0xfd   :  { %2915 = vrot.lane.b32.xlu1 %v2914_v51, %s3001_s30  ;;  %638 = vperm.xlu0 %2919, %v620_v54   ;;  %v1951_v51 = vld [vmem:[%s3852_s2 + $0xc8] sm:$0xff] }
  0xfe   :  { %v1955_v54 = vld [vmem:[%s3852_s2 + $0xe8] sm:$0xff] }
 0x101   :  { %643 = vperm.xlu1 %2920, %v621_v55   ;;  %653 = vperm.xlu0 %2919, %v623_v56   ;;  %v1957_v55 = vld [vmem:[%s3852_s2 + $0xf8] sm:$0xff]  ;;  %v234_v56 = vld [vmem:[%s3852_s2 + $0x8] sm:$0xff] }
 0x105   :  { %648 = vperm.xlu1 %2920, %v622_v57   ;;  %663 = vperm.xlu0 %2919, %v625_v58   ;;  %v236_v57 = vld [vmem:[%s3852_s2 + $0x18] sm:$0xff]  ;;  %v237_v58 = vld [vmem:[%s3852_s2 + $0x20] sm:$0xff] }
 0x109   :  { %658 = vperm.xlu1 %2920, %v624_v59   ;;  %673 = vperm.xlu0 %2919, %v627_v60   ;;  %v239_v59 = vld [vmem:[%s3852_s2 + $0x30] sm:$0xff]  ;;  %v240_v60 = vld [vmem:[%s3852_s2 + $0x38] sm:$0xff] }
 0x10d   :  { %668 = vperm.xlu1 %2920, %v626_v61   ;;  %683 = vperm.xlu0 %2919, %v629_v62   ;;  %v241_v61 = vld [vmem:[%s3852_s2 + $0x40] sm:$0xff]  ;;  %v242_v62 = vld [vmem:[%s3852_s2 + $0x48] sm:$0xff] }
 0x111   :  { %678 = vperm.xlu1 %2920, %v628_v63   ;;  %693 = vperm.xlu0 %2919, %v631_v0   ;;  %v243_v63 = vld [vmem:[%s3852_s2 + $0x50] sm:$0xff]  ;;  %v244_v0 = vld [vmem:[%s3852_s2 + $0x58] sm:$0xff] }
 0x115   :  { %688 = vperm.xlu1 %2920, %v630_v1   ;;  %703 = vperm.xlu0 %2919, %v633_v2   ;;  %v245_v1 = vld [vmem:[%s3852_s2 + $0x60] sm:$0xff]  ;;  %v246_v2 = vld [vmem:[%s3852_s2 + $0x68] sm:$0xff] }
 0x119   :  { %698 = vperm.xlu1 %2920, %v632_v3   ;;  %713 = vperm.xlu0 %2919, %v635_v4   ;;  %v247_v3 = vld [vmem:[%s3852_s2 + $0x70] sm:$0xff]  ;;  %v248_v4 = vld [vmem:[%s3852_s2 + $0x78] sm:$0xff] }
 0x11d   :  { %708 = vperm.xlu1 %2920, %v634_v5   ;;  %v748_v5 = vld [vmem:[%s3854_s3] sm:$0xff] }
 0x11e   :  { %2503 = vmatprep.mubr.f32.mxu0 %v748_v5 }
 0x153   :  { %v2881_v6 = vpop.permute.xlu0 %2880 }
 0x154   :  { %v2883_v7 = vunpack.i.h.bf16 %v2881_v6  ;;  %v2882_v8 = vunpack.i.l.bf16 %v2881_v6 }
 0x156   :  { %v2635_v9 = vpack.c.bf16 %v2883_v7, %v2882_v8 }
 0x157   :  { %v2886_v10 = vpop.permute.xlu0 %2885 }
 0x158   :  { %v2888_v11 = vunpack.i.h.bf16 %v2886_v10  ;;  %v2887_v12 = vunpack.i.l.bf16 %v2886_v10  ;;  %2636 = vmatprep.subr.bf16.mxu1 %v2635_v9 }
 0x159   :  { %2638 = vmatpush3.bf16.msra.mxu1 %v2635_v9 }
 0x15a   :  { %v2639_v13 = vpack.c.bf16 %v2888_v11, %v2887_v12 }
 0x15b   :  { %v2891_v14 = vpop.permute.xlu1 %2890 }
 0x15c   :  { %v2893_v15 = vunpack.i.h.bf16 %v2891_v14  ;;  %v2892_v16 = vunpack.i.l.bf16 %v2891_v14  ;;  %2640 = vmatprep.subr.bf16.mxu1 %v2639_v13 }
 0x15d   :  { %2642 = vmatpush3.bf16.msra.mxu1 %v2639_v13 }
 0x15e   :  { %v2643_v17 = vpack.c.bf16 %v2893_v15, %v2892_v16 }
 0x15f   :  { %v2896_v18 = vpop.permute.xlu1 %2895 }
 0x160   :  { %v2898_v19 = vunpack.i.h.bf16 %v2896_v18  ;;  %v2897_v20 = vunpack.i.l.bf16 %v2896_v18  ;;  %2644 = vmatprep.subr.bf16.mxu1 %v2643_v17 }
 0x161   :  { %2646 = vmatpush3.bf16.msra.mxu1 %v2643_v17 }
 0x162   :  { %v2647_v21 = vpack.c.bf16 %v2898_v19, %v2897_v20 }
 0x163   :  { %v2901_v23 = vpop.permute.xlu0 %2900 }
 0x164   :  { %v2903_v24 = vunpack.i.h.bf16 %v2901_v23  ;;  %v2902_v25 = vunpack.i.l.bf16 %v2901_v23  ;;  %2648 = vmatprep.subr.bf16.mxu1 %v2647_v21 }
 0x165   :  { %2650 = vmatpush3.bf16.msra.mxu1 %v2647_v21 }
 0x166   :  { %v2651_v26 = vpack.c.bf16 %v2903_v24, %v2902_v25 }
 0x167   :  { %v2906_v28 = vpop.permute.xlu1 %2905 }
 0x168   :  { %v2908_v29 = vunpack.i.h.bf16 %v2906_v28  ;;  %v2907_v31 = vunpack.i.l.bf16 %v2906_v28  ;;  %2652 = vmatprep.subr.bf16.mxu1 %v2651_v26 }
 0x169   :  { %2654 = vmatpush3.bf16.msra.mxu1 %v2651_v26 }
 0x16a   :  { %v2655_v32 = vpack.c.bf16 %v2908_v29, %v2907_v31 }
 0x16b   :  { %v2911_v33 = vpop.permute.xlu0 %2910 }
 0x16c   :  { %v2913_v34 = vunpack.i.h.bf16 %v2911_v33  ;;  %v2912_v36 = vunpack.i.l.bf16 %v2911_v33  ;;  %2656 = vmatprep.subr.bf16.mxu1 %v2655_v32 }
 0x16d   :  { %2658 = vmatpush3.bf16.msra.mxu1 %v2655_v32 }
 0x16e   :  { %v2659_v37 = vpack.c.bf16 %v2913_v34, %v2912_v36 }
 0x16f   :  { %v2916_v38 = vpop.permute.xlu1 %2915 }
 0x170   :  { %v2918_v40 = vunpack.i.h.bf16 %v2916_v38  ;;  %v2917_v41 = vunpack.i.l.bf16 %v2916_v38  ;;  %2660 = vmatprep.subr.bf16.mxu1 %v2659_v37 }
 0x171   :  { %2662 = vmatpush3.bf16.msra.mxu1 %v2659_v37 }
 0x172   :  { %v2663_v42 = vpack.c.bf16 %v2918_v40, %v2917_v41 }
 0x174   :  { %2664 = vmatprep.subr.bf16.mxu1 %v2663_v42 }
 0x175   :  { %2666 = vmatpush3.bf16.msra.mxu1 %v2663_v42 }
 0x176   :  { %2668 = vmatprep.subr.bf16.mxu1 %v3108_v22 }
 0x178   :  { %2312 = vmatmul.mubr.f32.vlgmr.msra.gmra.mrb[0].mxu1 %v1943_v44 }
 0x179   :  { %2670 = vmatpush3.bf16.msra.mxu1 %v3108_v22  ;;  %2314 = vmatprep.mubr.f32.mxu1 %v1944_v45  ;;  %v1948_v22 = vld [vmem:[%s3852_s2 + $0xb0] sm:$0xff] }
 0x17a   :  { %2672 = vmatprep.subr.bf16.mxu1 %v3111_v27 }
 0x17c   :  { %2315 = vmatmul.mubr.f32.gmra.mrb[2].mxu1 %v1945_v46  ;;  %v639_v6 = vpop.permute.xlu0 %638 }
 0x17d   :  { %2674 = vmatpush3.bf16.msra.mxu1 %v3111_v27  ;;  %2317 = vmatprep.mubr.f32.mxu1 %v1946_v47  ;;  %v1950_v27 = vld [vmem:[%s3852_s2 + $0xc0] sm:$0xff] }
 0x17e   :  { %2676 = vmatprep.subr.bf16.mxu1 %v3114_v30 }
 0x180   :  { %2318 = vmatmul.mubr.f32.gmra.mrb[4].mxu1 %v1947_v49  ;;  %v644_v7 = vpop.permute.xlu1 %643  ;;  %v654_v8 = vpop.permute.xlu0 %653 }
 0x181   :  { %2678 = vmatpush3.bf16.msra.mxu1 %v3114_v30  ;;  %2320 = vmatprep.mubr.f32.mxu1 %v1948_v22  ;;  %v1952_v30 = vld [vmem:[%s3852_s2 + $0xd0] sm:$0xff] }
 0x182   :  { %2680 = vmatprep.subr.bf16.mxu1 %v3117_v35 }
 0x184   :  { %2321 = vmatmul.mubr.f32.gmra.mrb[6].mxu1 %v1949_v50  ;;  %v649_v9 = vpop.permute.xlu1 %648  ;;  %v664_v10 = vpop.permute.xlu0 %663 }
 0x185   :  { %2682 = vmatpush3.bf16.msra.mxu1 %v3117_v35  ;;  %2323 = vmatprep.mubr.f32.mxu1 %v1950_v27  ;;  %v1954_v35 = vld [vmem:[%s3852_s2 + $0xe0] sm:$0xff] }
 0x186   :  { %2684 = vmatprep.subr.bf16.mxu1 %v3120_v39 }
 0x188   :  { %2324 = vmatmul.mubr.f32.gmra.mrb[8].mxu1 %v1951_v51  ;;  %v659_v11 = vpop.permute.xlu1 %658  ;;  %v674_v17 = vpop.permute.xlu0 %673 }
 0x189   :  { %2686 = vmatpush3.bf16.msra.mxu1 %v3120_v39  ;;  %2326 = vmatprep.mubr.f32.mxu1 %v1952_v30  ;;  %v1956_v39 = vld [vmem:[%s3852_s2 + $0xf0] sm:$0xff] }
 0x18a   :  { %2688 = vmatprep.subr.bf16.mxu1 %v3123_v43 }
 0x18c   :  { %2327 = vmatmul.mubr.f32.gmra.mrb[10].mxu1 %v1953_v53  ;;  %v669_v20 = vpop.permute.xlu1 %668  ;;  %v684_v34 = vpop.permute.xlu0 %683 }
 0x18d   :  { %2690 = vmatpush3.bf16.msra.mxu1 %v3123_v43  ;;  %2329 = vmatprep.mubr.f32.mxu1 %v1954_v35  ;;  %v233_v43 = vld [vmem:[%s3852_s2] sm:$0xff] }
 0x18e   :  { %2692 = vmatprep.subr.bf16.mxu1 %v3129_v48 }
 0x190   :  { %2330 = vmatmul.mubr.f32.gmra.mrb[12].mxu1 %v1955_v54  ;;  %v679_v40 = vpop.permute.xlu1 %678  ;;  %v694_v27 = vpop.permute.xlu0 %693 }
 0x191   :  { %2694 = vmatpush3.bf16.msra.mxu1 %v3129_v48  ;;  %2332 = vmatprep.mubr.f32.mxu1 %v1956_v39  ;;  %v235_v48 = vld [vmem:[%s3852_s2 + $0x10] sm:$0xff] }
 0x192   :  { %2696 = vmatprep.subr.bf16.mxu1 %v3132_v52 }
 0x194   :  { %2333 = vmatmul.mubr.f32.gmra.mrb[14].mxu1 %v1957_v55  ;;  %v689_v53 = vpop.permute.xlu1 %688 }
 0x195   :  { %2698 = vmatpush3.bf16.msra.mxu1 %v3132_v52  ;;  %2367 = vmatprep.mubr.f32.mxu1 %v233_v43  ;;  %v238_v52 = vld [vmem:[%s3852_s2 + $0x28] sm:$0xff]  ;;  %s3003_s2 = smov 112  }
 0x198   :  { %2368 = vmatmul.mubr.f32.vlgmr.msra.gmra.mrb[0].mxu1 %v234_v56 }
 0x199   :  { %2370 = vmatprep.mubr.f32.mxu1 %v235_v48 }
 0x19c   :  { %2371 = vmatmul.mubr.f32.gmra.mrb[2].mxu1 %v236_v57 }
 0x19d   :  { %2373 = vmatprep.mubr.f32.mxu1 %v237_v58 }
 0x1a0   :  { %2374 = vmatmul.mubr.f32.gmra.mrb[4].mxu1 %v238_v52 }
 0x1a1   :  { %2376 = vmatprep.mubr.f32.mxu1 %v239_v59  ;;  %v704_v59 = vpop.permute.xlu0 %703 }
 0x1a4   :  { %2377 = vmatmul.mubr.f32.gmra.mrb[6].mxu1 %v240_v60 }
 0x1a5   :  { %2379 = vmatprep.mubr.f32.mxu1 %v241_v61 }
 0x1a8   :  { %2380 = vmatmul.mubr.f32.gmra.mrb[8].mxu1 %v242_v62 }
 0x1a9   :  { %2382 = vmatprep.mubr.f32.mxu1 %v243_v63  ;;  %v699_v63 = vpop.permute.xlu1 %698 }
 0x1ac   :  { %2383 = vmatmul.mubr.f32.gmra.mrb[10].mxu1 %v244_v0 }
 0x1ad   :  { %2385 = vmatprep.mubr.f32.mxu1 %v245_v1 }
 0x1b0   :  { %2386 = vmatmul.mubr.f32.gmra.mrb[12].mxu1 %v246_v2 }
 0x1b1   :  { %2388 = vmatprep.mubr.f32.mxu1 %v247_v3 }
 0x1b4   :  { %2389 = vmatmul.mubr.f32.gmra.mrb[14].mxu1 %v248_v4 }
 0x26b   :  { %v2369_v12 = vpop.f32.mrb[0].mxu1 }
 0x26c   :  { %v717_v13 = vadd.f32 %v2369_v12, %v644_v7  ;;  %v541_v14 = vpop.f32.mrb[1].mxu1  ;;  %v1958_v12 = vld [vmem:[%s3854_s3 + $0x100] sm:$0xff] }
 0x26d   :  { %v716_v15 = vadd.f32 %v639_v6, %v541_v14  ;;  %2423 = vmatprep.mubr.f32.mxu1 %v1958_v12  ;;  %v1691_v12 = vld [vmem:[%s3853_s4 + $0x150] sm:$0xff] }
 0x26e   :  { %v733_v16 = vmax.f32 %v717_v13, 0.0  ;;  %v709_v13 = vpop.permute.xlu1 %708 }
 0x26f   :  { %v732_v18 = vmax.f32 %v716_v15, 0.0  ;;  %v2372_v19 = vpop.f32.mrb[2].mxu1 }
 0x270   :  { %v719_v21 = vadd.f32 %v2372_v19, %v654_v8  ;;  %v551_v23 = vpop.f32.mrb[3].mxu1 }
 0x271   :  { %v718_v24 = vadd.f32 %v649_v9, %v551_v23  ;;  %v2926_v25 = vpack.i.bf16 %v733_v16, %v732_v18  ;;  %v2731_v26 = vpack.c.bf16 %v733_v16, %v732_v18  ;;  %v714_v9 = vpop.permute.xlu0 %713 }
 0x272   :  { %v735_v28 = vmax.f32 %v719_v21, 0.0 }
 0x273   :  { %v734_v29 = vmax.f32 %v718_v24, 0.0  ;;  %2927 = vrot.lane.b32.xlu0 %v2926_v25, %s3003_s2  ;;  %2922 = vrot.lane.b32.xlu1 %v2926_v25, %s3004_s21  ;;  %v2375_v31 = vpop.f32.mrb[4].mxu1  ;;  %v1666_v24 = vld [vmem:[%s3853_s4 + $0x88] sm:$0xff]  ;;  %v1665_v25 = vld [vmem:[%s3853_s4 + $0x80] sm:$0xff] }
 0x274   :  { %v721_v32 = vadd.f32 %v2375_v31, %v664_v10  ;;  %2732 = vmatprep.subr.bf16.mxu0 %v2731_v26  ;;  %v561_v33 = vpop.f32.mrb[5].mxu1  ;;  %v1667_v31 = vld [vmem:[%s3853_s4 + $0x90] sm:$0xff] }
 0x275   :  { %v720_v36 = vadd.f32 %v659_v11, %v561_v33  ;;  %2734 = vmatpush3.bf16.msra.mxu0 %v2731_v26  ;;  %v2936_v37 = vpack.i.bf16 %v735_v28, %v734_v29  ;;  %v2735_v38 = vpack.c.bf16 %v735_v28, %v734_v29  ;;  %v749_v26 = vld [vmem:[%s3854_s3 + $0x8] sm:$0xff]  ;;  %v750_v28 = vld [vmem:[%s3854_s3 + $0x10] sm:$0xff]  ;;  %v1668_v29 = vld [vmem:[%s3853_s4 + $0x98] sm:$0xff] }
 0x276   :  { %v737_v41 = vmax.f32 %v721_v32, 0.0  ;;  %v751_v32 = vld [vmem:[%s3854_s3 + $0x18] sm:$0xff]  ;;  %v752_v33 = vld [vmem:[%s3854_s3 + $0x20] sm:$0xff] }
 0x277   :  { %v736_v42 = vmax.f32 %v720_v36, 0.0  ;;  %2937 = vrot.lane.b32.xlu0 %v2936_v37, %s3003_s2  ;;  %2932 = vrot.lane.b32.xlu1 %v2936_v37, %s3004_s21  ;;  %v2378_v44 = vpop.f32.mrb[6].mxu1  ;;  %v1669_v36 = vld [vmem:[%s3853_s4 + $0xa0] sm:$0xff]  ;;  %v753_v37 = vld [vmem:[%s3854_s3 + $0x28] sm:$0xff] }
 0x278   :  { %v723_v45 = vadd.f32 %v2378_v44, %v674_v17  ;;  %2736 = vmatprep.subr.bf16.mxu0 %v2735_v38  ;;  %v571_v46 = vpop.f32.mrb[7].mxu1  ;;  %v756_v44 = vld [vmem:[%s3854_s3 + $0x40] sm:$0xff] }
 0x279   :  { %v722_v47 = vadd.f32 %v669_v20, %v571_v46  ;;  %2738 = vmatpush3.bf16.msra.mxu0 %v2735_v38  ;;  %v2946_v49 = vpack.i.bf16 %v737_v41, %v736_v42  ;;  %v2739_v22 = vpack.c.bf16 %v737_v41, %v736_v42  ;;  %v754_v38 = vld [vmem:[%s3854_s3 + $0x30] sm:$0xff]  ;;  %v755_v42 = vld [vmem:[%s3854_s3 + $0x38] sm:$0xff]  ;;  %v1673_v46 = vld [vmem:[%s3853_s4 + $0xc0] sm:$0xff] }
 0x27a   :  { %v739_v50 = vmax.f32 %v723_v45, 0.0  ;;  %v1671_v41 = vld [vmem:[%s3853_s4 + $0xb0] sm:$0xff]  ;;  %v1674_v45 = vld [vmem:[%s3853_s4 + $0xc8] sm:$0xff] }
 0x27b   :  { %v738_v51 = vmax.f32 %v722_v47, 0.0  ;;  %2947 = vrot.lane.b32.xlu0 %v2946_v49, %s3003_s2  ;;  %2942 = vrot.lane.b32.xlu1 %v2946_v49, %s3004_s21  ;;  %v2381_v30 = vpop.f32.mrb[8].mxu1  ;;  %v757_v47 = vld [vmem:[%s3854_s3 + $0x48] sm:$0xff]  ;;  %v758_v49 = vld [vmem:[%s3854_s3 + $0x50] sm:$0xff] }
 0x27c   :  { %v725_v35 = vadd.f32 %v2381_v30, %v684_v34  ;;  %2740 = vmatprep.subr.bf16.mxu0 %v2739_v22  ;;  %v581_v54 = vpop.f32.mrb[9].mxu1  ;;  %v1670_v34 = vld [vmem:[%s3853_s4 + $0xa8] sm:$0xff] }
 0x27d   :  { %v724_v39 = vadd.f32 %v679_v40, %v581_v54  ;;  %2742 = vmatpush3.bf16.msra.mxu0 %v2739_v22  ;;  %v2956_v55 = vpack.i.bf16 %v739_v50, %v738_v51  ;;  %v2743_v43 = vpack.c.bf16 %v739_v50, %v738_v51  ;;  %v1672_v40 = vld [vmem:[%s3853_s4 + $0xb8] sm:$0xff]  ;;  %v1675_v50 = vld [vmem:[%s3853_s4 + $0xd0] sm:$0xff]  ;;  %v760_v51 = vld [vmem:[%s3854_s3 + $0x60] sm:$0xff] }
 0x27e   :  { %v741_v56 = vmax.f32 %v725_v35, 0.0  ;;  %v1676_v22 = vld [vmem:[%s3853_s4 + $0xd8] sm:$0xff]  ;;  %v1678_v30 = vld [vmem:[%s3853_s4 + $0xe8] sm:$0xff]  ;;  %v762_v54 = vld [vmem:[%s3854_s3 + $0x70] sm:$0xff] }
 0x27f   :  { %v740_v48 = vmax.f32 %v724_v39, 0.0  ;;  %2957 = vrot.lane.b32.xlu0 %v2956_v55, %s3003_s2  ;;  %2952 = vrot.lane.b32.xlu1 %v2956_v55, %s3004_s21  ;;  %v2384_v57 = vpop.f32.mrb[10].mxu1  ;;  %v761_v35 = vld [vmem:[%s3854_s3 + $0x68] sm:$0xff]  ;;  %v1680_v39 = vld [vmem:[%s3853_s4 + $0xf8] sm:$0xff] }
 0x280   :  { %v727_v58 = vadd.f32 %v2384_v57, %v694_v27  ;;  %2744 = vmatprep.subr.bf16.mxu0 %v2743_v43  ;;  %v591_v52 = vpop.f32.mrb[11].mxu1  ;;  %v759_v27 = vld [vmem:[%s3854_s3 + $0x58] sm:$0xff]  ;;  %v1679_v55 = vld [vmem:[%s3853_s4 + $0xf0] sm:$0xff]  ;;  %v1681_v57 = vld [vmem:[%s3853_s4 + $0x100] sm:$0xff] }
 0x281   :  { %v726_v60 = vadd.f32 %v689_v53, %v591_v52  ;;  %2746 = vmatpush3.bf16.msra.mxu0 %v2743_v43  ;;  %v2966_v61 = vpack.i.bf16 %v741_v56, %v740_v48  ;;  %v2747_v62 = vpack.c.bf16 %v741_v56, %v740_v48  ;;  %v1677_v53 = vld [vmem:[%s3853_s4 + $0xe0] sm:$0xff]  ;;  %v763_v43 = vld [vmem:[%s3854_s3 + $0x78] sm:$0xff]  ;;  %v1682_v48 = vld [vmem:[%s3853_s4 + $0x108] sm:$0xff] }
 0x282   :  { %v743_v0 = vmax.f32 %v727_v58, 0.0  ;;  %v764_v56 = vld [vmem:[%s3854_s3 + $0x80] sm:$0xff]  ;;  %v765_v58 = vld [vmem:[%s3854_s3 + $0x88] sm:$0xff]  ;;  %v766_v52 = vld [vmem:[%s3854_s3 + $0x90] sm:$0xff] }
 0x283   :  { %v742_v1 = vmax.f32 %v726_v60, 0.0  ;;  %2967 = vrot.lane.b32.xlu0 %v2966_v61, %s3003_s2  ;;  %2962 = vrot.lane.b32.xlu1 %v2966_v61, %s3004_s21  ;;  %v2387_v2 = vpop.f32.mrb[12].mxu1  ;;  %v1683_v60 = vld [vmem:[%s3853_s4 + $0x110] sm:$0xff]  ;;  %v767_v61 = vld [vmem:[%s3854_s3 + $0x98] sm:$0xff] }
 0x284   :  { %v729_v3 = vadd.f32 %v2387_v2, %v704_v59  ;;  %2748 = vmatprep.subr.bf16.mxu0 %v2747_v62  ;;  %v601_v4 = vpop.f32.mrb[13].mxu1  ;;  %v1684_v59 = vld [vmem:[%s3853_s4 + $0x118] sm:$0xff]  ;;  %v770_v2 = vld [vmem:[%s3854_s3 + $0xb0] sm:$0xff] }
 0x285   :  { %v728_v5 = vadd.f32 %v699_v63, %v601_v4  ;;  %2750 = vmatpush3.bf16.msra.mxu0 %v2747_v62  ;;  %v2976_v6 = vpack.i.bf16 %v743_v0, %v742_v1  ;;  %v2751_v7 = vpack.c.bf16 %v743_v0, %v742_v1  ;;  %v768_v62 = vld [vmem:[%s3854_s3 + $0xa0] sm:$0xff]  ;;  %v1686_v63 = vld [vmem:[%s3853_s4 + $0x128] sm:$0xff]  ;;  %v1687_v4 = vld [vmem:[%s3853_s4 + $0x130] sm:$0xff] }
 0x286   :  { %v745_v8 = vmax.f32 %v729_v3, 0.0  ;;  %v1685_v0 = vld [vmem:[%s3853_s4 + $0x120] sm:$0xff]  ;;  %v769_v1 = vld [vmem:[%s3854_s3 + $0xa8] sm:$0xff]  ;;  %v1688_v3 = vld [vmem:[%s3853_s4 + $0x138] sm:$0xff] }
 0x287   :  { %v744_v10 = vmax.f32 %v728_v5, 0.0  ;;  %2977 = vrot.lane.b32.xlu0 %v2976_v6, %s3003_s2  ;;  %2972 = vrot.lane.b32.xlu1 %v2976_v6, %s3004_s21  ;;  %v2390_v11 = vpop.f32.mrb[14].mxu1  ;;  %v771_v5 = vld [vmem:[%s3854_s3 + $0xb8] sm:$0xff]  ;;  %v772_v6 = vld [vmem:[%s3854_s3 + $0xc0] sm:$0xff] }
 0x288   :  { %v731_v14 = vadd.f32 %v2390_v11, %v714_v9  ;;  %2752 = vmatprep.subr.bf16.mxu0 %v2751_v7  ;;  %v611_v15 = vpop.f32.mrb[15].mxu1  ;;  %v773_v9 = vld [vmem:[%s3854_s3 + $0xc8] sm:$0xff]  ;;  %v1692_v11 = vld [vmem:[%s3853_s4 + $0x158] sm:$0xff] }
 0x289   :  { %v730_v16 = vadd.f32 %v709_v13, %v611_v15  ;;  %2754 = vmatpush3.bf16.msra.mxu0 %v2751_v7  ;;  %v2986_v17 = vpack.i.bf16 %v745_v8, %v744_v10  ;;  %v2755_v18 = vpack.c.bf16 %v745_v8, %v744_v10  ;;  %v1690_v7 = vld [vmem:[%s3853_s4 + $0x148] sm:$0xff]  ;;  %v1689_v8 = vld [vmem:[%s3853_s4 + $0x140] sm:$0xff]  ;;  %v774_v10 = vld [vmem:[%s3854_s3 + $0xd0] sm:$0xff] }
 0x28a   :  { %v747_v19 = vmax.f32 %v731_v14, 0.0  ;;  %v775_v13 = vld [vmem:[%s3854_s3 + $0xd8] sm:$0xff]  ;;  %v776_v14 = vld [vmem:[%s3854_s3 + $0xe0] sm:$0xff]  ;;  %v1694_v15 = vld [vmem:[%s3853_s4 + $0x168] sm:$0xff] }
 0x28b   :  { %v746_v20 = vmax.f32 %v730_v16, 0.0  ;;  %2987 = vrot.lane.b32.xlu0 %v2986_v17, %s3003_s2  ;;  %2982 = vrot.lane.b32.xlu1 %v2986_v17, %s3004_s21  ;;  %v1693_v16 = vld [vmem:[%s3853_s4 + $0x160] sm:$0xff]  ;;  %v777_v17 = vld [vmem:[%s3854_s3 + $0xe8] sm:$0xff] }
 0x28c   :  { %2756 = vmatprep.subr.bf16.mxu0 %v2755_v18 }
 0x28d   :  { %2758 = vmatpush3.bf16.msra.mxu0 %v2755_v18  ;;  %v2996_v21 = vpack.i.bf16 %v747_v19, %v746_v20  ;;  %v2759_v23 = vpack.c.bf16 %v747_v19, %v746_v20  ;;  %v778_v18 = vld [vmem:[%s3854_s3 + $0xf0] sm:$0xff]  ;;  %v1696_v19 = vld [vmem:[%s3853_s4 + $0x178] sm:$0xff] }
 0x28e   :  { %v1695_v20 = vld [vmem:[%s3853_s4 + $0x170] sm:$0xff] }
 0x28f   :  { %2997 = vrot.lane.b32.xlu0 %v2996_v21, %s3003_s2  ;;  %2992 = vrot.lane.b32.xlu1 %v2996_v21, %s3004_s21  ;;  %v779_v21 = vld [vmem:[%s3854_s3 + $0xf8] sm:$0xff] }
 0x290   :  { %2760 = vmatprep.subr.bf16.mxu0 %v2759_v23 }
 0x291   :  { %2762 = vmatpush3.bf16.msra.mxu0 %v2759_v23  ;;  %v1990_v23 = vld [vmem:[%s3854_s3 + $0x200] sm:$0xff] }
 0x293   :  { %1704 = vperm.xlu0 %2919, %v1666_v24   ;;  %1699 = vperm.xlu1 %2920, %v1665_v25  }
 0x294   :  { %2504 = vmatmul.mubr.f32.vlgmr.msra.gmra.mrb[16].mxu0 %v749_v26 }
 0x295   :  { %2506 = vmatprep.mubr.f32.mxu0 %v750_v28 }
 0x297   :  { %1714 = vperm.xlu0 %2919, %v1668_v29   ;;  %1709 = vperm.xlu1 %2920, %v1667_v31  }
 0x298   :  { %2507 = vmatmul.mubr.f32.gmra.mrb[18].mxu0 %v751_v32 }
 0x299   :  { %2509 = vmatprep.mubr.f32.mxu0 %v752_v33 }
 0x29b   :  { %1724 = vperm.xlu0 %2919, %v1670_v34   ;;  %1719 = vperm.xlu1 %2920, %v1669_v36  }
 0x29c   :  { %2510 = vmatmul.mubr.f32.gmra.mrb[20].mxu0 %v753_v37 }
 0x29d   :  { %2512 = vmatprep.mubr.f32.mxu0 %v754_v38 }
 0x29f   :  { %1734 = vperm.xlu0 %2919, %v1672_v40   ;;  %1729 = vperm.xlu1 %2920, %v1671_v41  }
 0x2a0   :  { %2513 = vmatmul.mubr.f32.gmra.mrb[22].mxu0 %v755_v42 }
 0x2a1   :  { %2515 = vmatprep.mubr.f32.mxu0 %v756_v44 }
 0x2a3   :  { %1744 = vperm.xlu0 %2919, %v1674_v45   ;;  %1739 = vperm.xlu1 %2920, %v1673_v46  }
 0x2a4   :  { %2516 = vmatmul.mubr.f32.gmra.mrb[24].mxu0 %v757_v47 }
 0x2a5   :  { %2518 = vmatprep.mubr.f32.mxu0 %v758_v49 }
 0x2a7   :  { %1754 = vperm.xlu0 %2919, %v1676_v22   ;;  %1749 = vperm.xlu1 %2920, %v1675_v50  }
 0x2a8   :  { %2519 = vmatmul.mubr.f32.gmra.mrb[26].mxu0 %v759_v27 }
 0x2a9   :  { %2521 = vmatprep.mubr.f32.mxu0 %v760_v51 }
 0x2ab   :  { %1764 = vperm.xlu0 %2919, %v1678_v30   ;;  %1759 = vperm.xlu1 %2920, %v1677_v53  }
 0x2ac   :  { %2522 = vmatmul.mubr.f32.gmra.mrb[28].mxu0 %v761_v35 }
 0x2ad   :  { %2524 = vmatprep.mubr.f32.mxu0 %v762_v54 }
 0x2af   :  { %1774 = vperm.xlu0 %2919, %v1680_v39   ;;  %1769 = vperm.xlu1 %2920, %v1679_v55  }
 0x2b0   :  { %2525 = vmatmul.mubr.f32.gmra.mrb[30].mxu0 %v763_v43 }
 0x2b1   :  { %2527 = vmatprep.mubr.f32.mxu0 %v764_v56 }
 0x2b3   :  { %1784 = vperm.xlu0 %2919, %v1682_v48   ;;  %1779 = vperm.xlu1 %2920, %v1681_v57  }
 0x2b4   :  { %2528 = vmatmul.mubr.f32.gmra.mrb[32].mxu0 %v765_v58 }
 0x2b5   :  { %2530 = vmatprep.mubr.f32.mxu0 %v766_v52 }
 0x2b7   :  { %1794 = vperm.xlu0 %2919, %v1684_v59   ;;  %1789 = vperm.xlu1 %2920, %v1683_v60  }
 0x2b8   :  { %2531 = vmatmul.mubr.f32.gmra.mrb[34].mxu0 %v767_v61 }
 0x2b9   :  { %2533 = vmatprep.mubr.f32.mxu0 %v768_v62 }
 0x2bb   :  { %1804 = vperm.xlu0 %2919, %v1686_v63   ;;  %1799 = vperm.xlu1 %2920, %v1685_v0  }
 0x2bc   :  { %2534 = vmatmul.mubr.f32.gmra.mrb[36].mxu0 %v769_v1 }
 0x2bd   :  { %2536 = vmatprep.mubr.f32.mxu0 %v770_v2 }
 0x2bf   :  { %1814 = vperm.xlu0 %2919, %v1688_v3   ;;  %1809 = vperm.xlu1 %2920, %v1687_v4  }
 0x2c0   :  { %2537 = vmatmul.mubr.f32.gmra.mrb[38].mxu0 %v771_v5 }
 0x2c1   :  { %2539 = vmatprep.mubr.f32.mxu0 %v772_v6 }
 0x2c3   :  { %1824 = vperm.xlu0 %2919, %v1690_v7   ;;  %1819 = vperm.xlu1 %2920, %v1689_v8  }
 0x2c4   :  { %2540 = vmatmul.mubr.f32.gmra.mrb[40].mxu0 %v773_v9 }
 0x2c5   :  { %2542 = vmatprep.mubr.f32.mxu0 %v774_v10 }
 0x2c7   :  { %1834 = vperm.xlu0 %2919, %v1692_v11   ;;  %1829 = vperm.xlu1 %2920, %v1691_v12  }
 0x2c8   :  { %2543 = vmatmul.mubr.f32.gmra.mrb[42].mxu0 %v775_v13 }
 0x2c9   :  { %2545 = vmatprep.mubr.f32.mxu0 %v776_v14 }
 0x2cb   :  { %1844 = vperm.xlu0 %2919, %v1694_v15   ;;  %1839 = vperm.xlu1 %2920, %v1693_v16  }
 0x2cc   :  { %2546 = vmatmul.mubr.f32.gmra.mrb[44].mxu0 %v777_v17 }
 0x2cd   :  { %2548 = vmatprep.mubr.f32.mxu0 %v778_v18 }
 0x2cf   :  { %1854 = vperm.xlu0 %2919, %v1696_v19   ;;  %1849 = vperm.xlu1 %2920, %v1695_v20  }
 0x2d0   :  { %2549 = vmatmul.mubr.f32.gmra.mrb[46].mxu0 %v779_v21 }
 0x2d1   :  { %2583 = vmatprep.mubr.f32.mxu0 %v1990_v23 }
 0x2e5   :  { %v2928_v24 = vpop.permute.xlu0 %2927  ;;  %v2923_v25 = vpop.permute.xlu1 %2922 }
 0x2e6   :  { %v2930_v26 = vunpack.i.h.bf16 %v2928_v24  ;;  %v2929_v28 = vunpack.i.l.bf16 %v2928_v24  ;;  %v2925_v29 = vunpack.i.h.bf16 %v2923_v25  ;;  %v2924_v31 = vunpack.i.l.bf16 %v2923_v25  ;;  %v1959_v24 = vld [vmem:[%s3854_s3 + $0x108] sm:$0xff] }
 0x2e7   :  { %v1991_v25 = vld [vmem:[%s3854_s3 + $0x208] sm:$0xff] }
 0x2e8   :  { %v2763_v32 = vpack.c.bf16 %v2930_v26, %v2929_v28  ;;  %v2699_v33 = vpack.c.bf16 %v2925_v29, %v2924_v31  ;;  %v1960_v26 = vld [vmem:[%s3854_s3 + $0x110] sm:$0xff]  ;;  %v1961_v29 = vld [vmem:[%s3854_s3 + $0x118] sm:$0xff] }
 0x2e9   :  { %v2938_v34 = vpop.permute.xlu0 %2937  ;;  %v2933_v36 = vpop.permute.xlu1 %2932  ;;  %v1992_v28 = vld [vmem:[%s3854_s3 + $0x210] sm:$0xff]  ;;  %v1993_v31 = vld [vmem:[%s3854_s3 + $0x218] sm:$0xff] }
 0x2ea   :  { %v2940_v37 = vunpack.i.h.bf16 %v2938_v34  ;;  %v2939_v38 = vunpack.i.l.bf16 %v2938_v34  ;;  %v2935_v40 = vunpack.i.h.bf16 %v2933_v36  ;;  %v2934_v41 = vunpack.i.l.bf16 %v2933_v36  ;;  %2700 = vmatprep.subr.bf16.mxu1 %v2699_v33  ;;  %2764 = vmatprep.subr.bf16.mxu0 %v2763_v32  ;;  %v1963_v34 = vld [vmem:[%s3854_s3 + $0x128] sm:$0xff] }
 0x2eb   :  { %2702 = vmatpush3.bf16.msra.mxu1 %v2699_v33  ;;  %2766 = vmatpush3.bf16.msra.mxu0 %v2763_v32  ;;  %v1962_v32 = vld [vmem:[%s3854_s3 + $0x120] sm:$0xff]  ;;  %v1995_v36 = vld [vmem:[%s3854_s3 + $0x228] sm:$0xff] }
 0x2ec   :  { %v2767_v42 = vpack.c.bf16 %v2940_v37, %v2939_v38  ;;  %v2703_v44 = vpack.c.bf16 %v2935_v40, %v2934_v41  ;;  %v1994_v33 = vld [vmem:[%s3854_s3 + $0x220] sm:$0xff]  ;;  %v1964_v37 = vld [vmem:[%s3854_s3 + $0x130] sm:$0xff]  ;;  %v1965_v40 = vld [vmem:[%s3854_s3 + $0x138] sm:$0xff] }
 0x2ed   :  { %v2948_v45 = vpop.permute.xlu0 %2947  ;;  %v2943_v46 = vpop.permute.xlu1 %2942  ;;  %v1996_v38 = vld [vmem:[%s3854_s3 + $0x230] sm:$0xff]  ;;  %v1997_v41 = vld [vmem:[%s3854_s3 + $0x238] sm:$0xff] }
 0x2ee   :  { %v2950_v47 = vunpack.i.h.bf16 %v2948_v45  ;;  %v2949_v49 = vunpack.i.l.bf16 %v2948_v45  ;;  %v2945_v22 = vunpack.i.h.bf16 %v2943_v46  ;;  %v2944_v50 = vunpack.i.l.bf16 %v2943_v46  ;;  %2704 = vmatprep.subr.bf16.mxu1 %v2703_v44  ;;  %2768 = vmatprep.subr.bf16.mxu0 %v2767_v42  ;;  %v1967_v45 = vld [vmem:[%s3854_s3 + $0x148] sm:$0xff] }
 0x2ef   :  { %2706 = vmatpush3.bf16.msra.mxu1 %v2703_v44  ;;  %2770 = vmatpush3.bf16.msra.mxu0 %v2767_v42  ;;  %v1966_v42 = vld [vmem:[%s3854_s3 + $0x140] sm:$0xff]  ;;  %v1999_v46 = vld [vmem:[%s3854_s3 + $0x248] sm:$0xff] }
 0x2f0   :  { %v2771_v27 = vpack.c.bf16 %v2950_v47, %v2949_v49  ;;  %v2707_v51 = vpack.c.bf16 %v2945_v22, %v2944_v50  ;;  %v1998_v44 = vld [vmem:[%s3854_s3 + $0x240] sm:$0xff]  ;;  %v1968_v47 = vld [vmem:[%s3854_s3 + $0x150] sm:$0xff]  ;;  %v1969_v22 = vld [vmem:[%s3854_s3 + $0x158] sm:$0xff] }
 0x2f1   :  { %v2958_v30 = vpop.permute.xlu0 %2957  ;;  %v2953_v53 = vpop.permute.xlu1 %2952  ;;  %v2000_v49 = vld [vmem:[%s3854_s3 + $0x250] sm:$0xff]  ;;  %v2001_v50 = vld [vmem:[%s3854_s3 + $0x258] sm:$0xff] }
 0x2f2   :  { %v2960_v35 = vunpack.i.h.bf16 %v2958_v30  ;;  %v2959_v54 = vunpack.i.l.bf16 %v2958_v30  ;;  %v2955_v39 = vunpack.i.h.bf16 %v2953_v53  ;;  %v2954_v55 = vunpack.i.l.bf16 %v2953_v53  ;;  %2708 = vmatprep.subr.bf16.mxu1 %v2707_v51  ;;  %2772 = vmatprep.subr.bf16.mxu0 %v2771_v27  ;;  %v1971_v30 = vld [vmem:[%s3854_s3 + $0x168] sm:$0xff] }
 0x2f3   :  { %2710 = vmatpush3.bf16.msra.mxu1 %v2707_v51  ;;  %2774 = vmatpush3.bf16.msra.mxu0 %v2771_v27  ;;  %v1970_v27 = vld [vmem:[%s3854_s3 + $0x160] sm:$0xff]  ;;  %v2003_v53 = vld [vmem:[%s3854_s3 + $0x268] sm:$0xff] }
 0x2f4   :  { %v2775_v43 = vpack.c.bf16 %v2960_v35, %v2959_v54  ;;  %v2711_v56 = vpack.c.bf16 %v2955_v39, %v2954_v55  ;;  %v2002_v51 = vld [vmem:[%s3854_s3 + $0x260] sm:$0xff]  ;;  %v1972_v35 = vld [vmem:[%s3854_s3 + $0x170] sm:$0xff]  ;;  %v1973_v39 = vld [vmem:[%s3854_s3 + $0x178] sm:$0xff] }
 0x2f5   :  { %v2968_v48 = vpop.permute.xlu0 %2967  ;;  %v2963_v57 = vpop.permute.xlu1 %2962  ;;  %v2004_v54 = vld [vmem:[%s3854_s3 + $0x270] sm:$0xff]  ;;  %v2005_v55 = vld [vmem:[%s3854_s3 + $0x278] sm:$0xff] }
 0x2f6   :  { %v2970_v58 = vunpack.i.h.bf16 %v2968_v48  ;;  %v2969_v52 = vunpack.i.l.bf16 %v2968_v48  ;;  %v2965_v59 = vunpack.i.h.bf16 %v2963_v57  ;;  %v2964_v60 = vunpack.i.l.bf16 %v2963_v57  ;;  %2712 = vmatprep.subr.bf16.mxu1 %v2711_v56  ;;  %2776 = vmatprep.subr.bf16.mxu0 %v2775_v43  ;;  %v1975_v48 = vld [vmem:[%s3854_s3 + $0x188] sm:$0xff] }
 0x2f7   :  { %2714 = vmatpush3.bf16.msra.mxu1 %v2711_v56  ;;  %2778 = vmatpush3.bf16.msra.mxu0 %v2775_v43  ;;  %v1974_v43 = vld [vmem:[%s3854_s3 + $0x180] sm:$0xff]  ;;  %v2007_v57 = vld [vmem:[%s3854_s3 + $0x288] sm:$0xff] }
 0x2f8   :  { %v2779_v61 = vpack.c.bf16 %v2970_v58, %v2969_v52  ;;  %v2715_v62 = vpack.c.bf16 %v2965_v59, %v2964_v60  ;;  %v2006_v56 = vld [vmem:[%s3854_s3 + $0x280] sm:$0xff]  ;;  %v1976_v58 = vld [vmem:[%s3854_s3 + $0x190] sm:$0xff]  ;;  %v1977_v59 = vld [vmem:[%s3854_s3 + $0x198] sm:$0xff] }
 0x2f9   :  { %v2978_v63 = vpop.permute.xlu0 %2977  ;;  %v2973_v0 = vpop.permute.xlu1 %2972  ;;  %v2008_v52 = vld [vmem:[%s3854_s3 + $0x290] sm:$0xff]  ;;  %v2009_v60 = vld [vmem:[%s3854_s3 + $0x298] sm:$0xff] }
 0x2fa   :  { %v2980_v1 = vunpack.i.h.bf16 %v2978_v63  ;;  %v2979_v2 = vunpack.i.l.bf16 %v2978_v63  ;;  %v2975_v3 = vunpack.i.h.bf16 %v2973_v0  ;;  %v2974_v4 = vunpack.i.l.bf16 %v2973_v0  ;;  %2716 = vmatprep.subr.bf16.mxu1 %v2715_v62  ;;  %2780 = vmatprep.subr.bf16.mxu0 %v2779_v61  ;;  %v1979_v63 = vld [vmem:[%s3854_s3 + $0x1a8] sm:$0xff] }
 0x2fb   :  { %2718 = vmatpush3.bf16.msra.mxu1 %v2715_v62  ;;  %2782 = vmatpush3.bf16.msra.mxu0 %v2779_v61  ;;  %v1978_v61 = vld [vmem:[%s3854_s3 + $0x1a0] sm:$0xff]  ;;  %v2011_v0 = vld [vmem:[%s3854_s3 + $0x2a8] sm:$0xff] }
 0x2fc   :  { %v2783_v5 = vpack.c.bf16 %v2980_v1, %v2979_v2  ;;  %v2719_v6 = vpack.c.bf16 %v2975_v3, %v2974_v4  ;;  %v2010_v62 = vld [vmem:[%s3854_s3 + $0x2a0] sm:$0xff]  ;;  %v1980_v1 = vld [vmem:[%s3854_s3 + $0x1b0] sm:$0xff]  ;;  %v1981_v3 = vld [vmem:[%s3854_s3 + $0x1b8] sm:$0xff] }
 0x2fd   :  { %v2988_v7 = vpop.permute.xlu0 %2987  ;;  %v2983_v8 = vpop.permute.xlu1 %2982  ;;  %v2012_v2 = vld [vmem:[%s3854_s3 + $0x2b0] sm:$0xff]  ;;  %v2013_v4 = vld [vmem:[%s3854_s3 + $0x2b8] sm:$0xff] }
 0x2fe   :  { %v2990_v9 = vunpack.i.h.bf16 %v2988_v7  ;;  %v2989_v10 = vunpack.i.l.bf16 %v2988_v7  ;;  %v2985_v11 = vunpack.i.h.bf16 %v2983_v8  ;;  %v2984_v12 = vunpack.i.l.bf16 %v2983_v8  ;;  %2720 = vmatprep.subr.bf16.mxu1 %v2719_v6  ;;  %2784 = vmatprep.subr.bf16.mxu0 %v2783_v5  ;;  %v1983_v7 = vld [vmem:[%s3854_s3 + $0x1c8] sm:$0xff] }
 0x2ff   :  { %2722 = vmatpush3.bf16.msra.mxu1 %v2719_v6  ;;  %2786 = vmatpush3.bf16.msra.mxu0 %v2783_v5  ;;  %v1982_v5 = vld [vmem:[%s3854_s3 + $0x1c0] sm:$0xff]  ;;  %v2015_v8 = vld [vmem:[%s3854_s3 + $0x2c8] sm:$0xff] }
 0x300   :  { %v2787_v13 = vpack.c.bf16 %v2990_v9, %v2989_v10  ;;  %v2723_v14 = vpack.c.bf16 %v2985_v11, %v2984_v12  ;;  %v2014_v6 = vld [vmem:[%s3854_s3 + $0x2c0] sm:$0xff]  ;;  %v1984_v9 = vld [vmem:[%s3854_s3 + $0x1d0] sm:$0xff]  ;;  %v1985_v11 = vld [vmem:[%s3854_s3 + $0x1d8] sm:$0xff] }
 0x301   :  { %v2998_v15 = vpop.permute.xlu0 %2997  ;;  %v2993_v16 = vpop.permute.xlu1 %2992  ;;  %v2016_v10 = vld [vmem:[%s3854_s3 + $0x2d0] sm:$0xff]  ;;  %v2017_v12 = vld [vmem:[%s3854_s3 + $0x2d8] sm:$0xff] }
 0x302   :  { %v3000_v17 = vunpack.i.h.bf16 %v2998_v15  ;;  %v2999_v18 = vunpack.i.l.bf16 %v2998_v15  ;;  %v2995_v19 = vunpack.i.h.bf16 %v2993_v16  ;;  %v2994_v20 = vunpack.i.l.bf16 %v2993_v16  ;;  %2724 = vmatprep.subr.bf16.mxu1 %v2723_v14  ;;  %2788 = vmatprep.subr.bf16.mxu0 %v2787_v13  ;;  %v1987_v15 = vld [vmem:[%s3854_s3 + $0x1e8] sm:$0xff] }
 0x303   :  { %2726 = vmatpush3.bf16.msra.mxu1 %v2723_v14  ;;  %2790 = vmatpush3.bf16.msra.mxu0 %v2787_v13  ;;  %v1986_v13 = vld [vmem:[%s3854_s3 + $0x1e0] sm:$0xff]  ;;  %v2019_v16 = vld [vmem:[%s3854_s3 + $0x2e8] sm:$0xff] }
 0x304   :  { %v2791_v21 = vpack.c.bf16 %v3000_v17, %v2999_v18  ;;  %v2727_v23 = vpack.c.bf16 %v2995_v19, %v2994_v20  ;;  %v2018_v14 = vld [vmem:[%s3854_s3 + $0x2e0] sm:$0xff]  ;;  %v1988_v17 = vld [vmem:[%s3854_s3 + $0x1f0] sm:$0xff]  ;;  %v1989_v19 = vld [vmem:[%s3854_s3 + $0x1f8] sm:$0xff] }
 0x305   :  { %v2020_v18 = vld [vmem:[%s3854_s3 + $0x2f0] sm:$0xff]  ;;  %v2021_v20 = vld [vmem:[%s3854_s3 + $0x2f8] sm:$0xff] }
 0x306   :  { %2728 = vmatprep.subr.bf16.mxu1 %v2727_v23  ;;  %2792 = vmatprep.subr.bf16.mxu0 %v2791_v21 }
 0x307   :  { %2730 = vmatpush3.bf16.msra.mxu1 %v2727_v23  ;;  %2794 = vmatpush3.bf16.msra.mxu0 %v2791_v21 }
 0x30a   :  { %2424 = vmatmul.mubr.f32.vlgmr.msra.gmra.mrb[16].mxu1 %v1959_v24  ;;  %2584 = vmatmul.mubr.f32.vlgmr.msra.gmra.mrb[16].mxu0 %v1991_v25 }
 0x30b   :  { %2426 = vmatprep.mubr.f32.mxu1 %v1960_v26  ;;  %2586 = vmatprep.mubr.f32.mxu0 %v1992_v28 }
 0x30e   :  { %2427 = vmatmul.mubr.f32.gmra.mrb[18].mxu1 %v1961_v29  ;;  %2587 = vmatmul.mubr.f32.gmra.mrb[18].mxu0 %v1993_v31 }
 0x30f   :  { %2429 = vmatprep.mubr.f32.mxu1 %v1962_v32  ;;  %2589 = vmatprep.mubr.f32.mxu0 %v1994_v33 }
 0x312   :  { %2430 = vmatmul.mubr.f32.gmra.mrb[20].mxu1 %v1963_v34  ;;  %2590 = vmatmul.mubr.f32.gmra.mrb[20].mxu0 %v1995_v36  ;;  %v1705_v21 = vpop.permute.xlu0 %1704  ;;  %v1700_v23 = vpop.permute.xlu1 %1699 }
 0x313   :  { %2432 = vmatprep.mubr.f32.mxu1 %v1964_v37  ;;  %2592 = vmatprep.mubr.f32.mxu0 %v1996_v38 }
 0x316   :  { %2433 = vmatmul.mubr.f32.gmra.mrb[22].mxu1 %v1965_v40  ;;  %2593 = vmatmul.mubr.f32.gmra.mrb[22].mxu0 %v1997_v41  ;;  %v1715_v24 = vpop.permute.xlu0 %1714  ;;  %v1710_v25 = vpop.permute.xlu1 %1709 }
 0x317   :  { %2435 = vmatprep.mubr.f32.mxu1 %v1966_v42  ;;  %2595 = vmatprep.mubr.f32.mxu0 %v1998_v44 }
 0x31a   :  { %2436 = vmatmul.mubr.f32.gmra.mrb[24].mxu1 %v1967_v45  ;;  %2596 = vmatmul.mubr.f32.gmra.mrb[24].mxu0 %v1999_v46  ;;  %v1725_v26 = vpop.permute.xlu0 %1724  ;;  %v1720_v28 = vpop.permute.xlu1 %1719 }
 0x31b   :  { %2438 = vmatprep.mubr.f32.mxu1 %v1968_v47  ;;  %2598 = vmatprep.mubr.f32.mxu0 %v2000_v49 }
 0x31e   :  { %2439 = vmatmul.mubr.f32.gmra.mrb[26].mxu1 %v1969_v22  ;;  %2599 = vmatmul.mubr.f32.gmra.mrb[26].mxu0 %v2001_v50  ;;  %v1735_v29 = vpop.permute.xlu0 %1734  ;;  %v1730_v31 = vpop.permute.xlu1 %1729 }
 0x31f   :  { %2441 = vmatprep.mubr.f32.mxu1 %v1970_v27  ;;  %2601 = vmatprep.mubr.f32.mxu0 %v2002_v51 }
 0x322   :  { %2442 = vmatmul.mubr.f32.gmra.mrb[28].mxu1 %v1971_v30  ;;  %2602 = vmatmul.mubr.f32.gmra.mrb[28].mxu0 %v2003_v53  ;;  %v1745_v32 = vpop.permute.xlu0 %1744  ;;  %v1740_v33 = vpop.permute.xlu1 %1739 }
 0x323   :  { %2444 = vmatprep.mubr.f32.mxu1 %v1972_v35  ;;  %2604 = vmatprep.mubr.f32.mxu0 %v2004_v54 }
 0x326   :  { %2445 = vmatmul.mubr.f32.gmra.mrb[30].mxu1 %v1973_v39  ;;  %2605 = vmatmul.mubr.f32.gmra.mrb[30].mxu0 %v2005_v55  ;;  %v3692_v34 = vpop.permute.xlu0 %1754  ;;  %v3694_v36 = vpop.permute.xlu1 %1749 }
 0x327   :  { %2447 = vmatprep.mubr.f32.mxu1 %v1974_v43  ;;  %2607 = vmatprep.mubr.f32.mxu0 %v2006_v56 }
 0x32a   :  { %2448 = vmatmul.mubr.f32.gmra.mrb[32].mxu1 %v1975_v48  ;;  %2608 = vmatmul.mubr.f32.gmra.mrb[32].mxu0 %v2007_v57  ;;  %v3696_v37 = vpop.permute.xlu0 %1764  ;;  %v3698_v38 = vpop.permute.xlu1 %1759 }
 0x32b   :  { %2450 = vmatprep.mubr.f32.mxu1 %v1976_v58  ;;  %2610 = vmatprep.mubr.f32.mxu0 %v2008_v52 }
 0x32e   :  { %2451 = vmatmul.mubr.f32.gmra.mrb[34].mxu1 %v1977_v59  ;;  %2611 = vmatmul.mubr.f32.gmra.mrb[34].mxu0 %v2009_v60  ;;  %v3700_v40 = vpop.permute.xlu0 %1774  ;;  %v3702_v41 = vpop.permute.xlu1 %1769 }
 0x32f   :  { %2453 = vmatprep.mubr.f32.mxu1 %v1978_v61  ;;  %2613 = vmatprep.mubr.f32.mxu0 %v2010_v62 }
 0x332   :  { %2454 = vmatmul.mubr.f32.gmra.mrb[36].mxu1 %v1979_v63  ;;  %2614 = vmatmul.mubr.f32.gmra.mrb[36].mxu0 %v2011_v0  ;;  %v3712_v39 = vpop.permute.xlu0 %1784  ;;  %v3714_v55 = vpop.permute.xlu1 %1779 }
 0x333   :  { %2456 = vmatprep.mubr.f32.mxu1 %v1980_v1  ;;  %2616 = vmatprep.mubr.f32.mxu0 %v2012_v2 }
 0x336   :  { %2457 = vmatmul.mubr.f32.gmra.mrb[38].mxu1 %v1981_v3  ;;  %2617 = vmatmul.mubr.f32.gmra.mrb[38].mxu0 %v2013_v4 }
 0x337   :  { %2459 = vmatprep.mubr.f32.mxu1 %v1982_v5  ;;  %2619 = vmatprep.mubr.f32.mxu0 %v2014_v6  ;;  %v3732_v5 = vpop.permute.xlu0 %1794  ;;  %v3734_v6 = vpop.permute.xlu1 %1789 }
 0x33a   :  { %2460 = vmatmul.mubr.f32.gmra.mrb[40].mxu1 %v1983_v7  ;;  %2620 = vmatmul.mubr.f32.gmra.mrb[40].mxu0 %v2015_v8 }
 0x33b   :  { %2462 = vmatprep.mubr.f32.mxu1 %v1984_v9  ;;  %2622 = vmatprep.mubr.f32.mxu0 %v2016_v10 }
 0x33e   :  { %2463 = vmatmul.mubr.f32.gmra.mrb[42].mxu1 %v1985_v11  ;;  %2623 = vmatmul.mubr.f32.gmra.mrb[42].mxu0 %v2017_v12 }
 0x33f   :  { %2465 = vmatprep.mubr.f32.mxu1 %v1986_v13  ;;  %2625 = vmatprep.mubr.f32.mxu0 %v2018_v14 }
 0x342   :  { %2466 = vmatmul.mubr.f32.gmra.mrb[44].mxu1 %v1987_v15  ;;  %2626 = vmatmul.mubr.f32.gmra.mrb[44].mxu0 %v2019_v16 }
 0x343   :  { %2468 = vmatprep.mubr.f32.mxu1 %v1988_v17  ;;  %2628 = vmatprep.mubr.f32.mxu0 %v2020_v18 }
 0x346   :  { %2469 = vmatmul.mubr.f32.gmra.mrb[46].mxu1 %v1989_v19  ;;  %2629 = vmatmul.mubr.f32.gmra.mrb[46].mxu0 %v2021_v20 }
 0x3dd   :  { %v2425_v42 = vpop.f32.mrb[16].mxu1  ;;  %v2585_v44 = vpop.f32.mrb[16].mxu0 }
 0x3de   :  { %v2795_v45 = vadd.f32 %v2585_v44, %v2425_v42  ;;  %v943_v46 = vpop.f32.mrb[17].mxu1  ;;  %v1474_v47 = vpop.f32.mrb[17].mxu0 }
 0x3df   :  { %v2796_v49 = vadd.f32 %v1474_v47, %v943_v46 }
 0x3e0   :  { %v1858_v22 = vadd.f32 %v2795_v45, %v1705_v21 }
 0x3e1   :  { %v1857_v50 = vadd.f32 %v2796_v49, %v1700_v23  ;;  %v2428_v27 = vpop.f32.mrb[18].mxu1  ;;  %v2588_v51 = vpop.f32.mrb[18].mxu0 }
 0x3e2   :  { %1891 = vst.msk [vmem:[%s3855_s5 + $0x8] sm:$0xff] %vm1889_vm1, %v1858_v22  ;;  %v2797_v30 = vadd.f32 %v2588_v51, %v2428_v27  ;;  %v953_v53 = vpop.f32.mrb[19].mxu1  ;;  %v1484_v35 = vpop.f32.mrb[19].mxu0 }
 0x3e3   :  { %1890 = vst.msk [vmem:[%s3855_s5] sm:$0xff] %vm1889_vm1, %v1857_v50  ;;  %v2798_v54 = vadd.f32 %v1484_v35, %v953_v53 }
 0x3e4   :  { %v1860_v43 = vadd.f32 %v2797_v30, %v1715_v24  ;;  %v1805_v24 = vpop.permute.xlu0 %1804 }
 0x3e5   :  { %v1859_v56 = vadd.f32 %v2798_v54, %v1710_v25  ;;  %v2431_v48 = vpop.f32.mrb[20].mxu1  ;;  %v2591_v57 = vpop.f32.mrb[20].mxu0 }
 0x3e6   :  { %1893 = vst.msk [vmem:[%s3855_s5 + $0x18] sm:$0xff] %vm1889_vm1, %v1860_v43  ;;  %v2799_v58 = vadd.f32 %v2591_v57, %v2431_v48  ;;  %v963_v52 = vpop.f32.mrb[21].mxu1  ;;  %v1494_v59 = vpop.f32.mrb[21].mxu0 }
 0x3e7   :  { %1892 = vst.msk [vmem:[%s3855_s5 + $0x10] sm:$0xff] %vm1889_vm1, %v1859_v56  ;;  %v2800_v60 = vadd.f32 %v1494_v59, %v963_v52  ;;  %v1800_v25 = vpop.permute.xlu1 %1799 }
 0x3e8   :  { %v1862_v61 = vadd.f32 %v2799_v58, %v1725_v26  ;;  %v1815_v27 = vpop.permute.xlu0 %1814 }
 0x3e9   :  { %v1861_v62 = vadd.f32 %v2800_v60, %v1720_v28  ;;  %v2434_v63 = vpop.f32.mrb[22].mxu1  ;;  %v2594_v0 = vpop.f32.mrb[22].mxu0 }
 0x3ea   :  { %1895 = vst.msk [vmem:[%s3855_s5 + $0x28] sm:$0xff] %vm1889_vm1, %v1862_v61  ;;  %v2801_v1 = vadd.f32 %v2594_v0, %v2434_v63  ;;  %v973_v2 = vpop.f32.mrb[23].mxu1  ;;  %v1504_v3 = vpop.f32.mrb[23].mxu0 }
 0x3eb   :  { %1894 = vst.msk [vmem:[%s3855_s5 + $0x20] sm:$0xff] %vm1889_vm1, %v1861_v62  ;;  %v2802_v4 = vadd.f32 %v1504_v3, %v973_v2 }
 0x3ec   :  { %v1864_v7 = vadd.f32 %v2801_v1, %v1735_v29  ;;  %v1825_v61 = vpop.permute.xlu0 %1824 }
 0x3ed   :  { %v1863_v8 = vadd.f32 %v2802_v4, %v1730_v31  ;;  %v2437_v9 = vpop.f32.mrb[24].mxu1  ;;  %v2597_v10 = vpop.f32.mrb[24].mxu0 }
 0x3ee   :  { %1897 = vst.msk [vmem:[%s3855_s5 + $0x38] sm:$0xff] %vm1889_vm1, %v1864_v7  ;;  %v2803_v11 = vadd.f32 %v2597_v10, %v2437_v9  ;;  %v983_v12 = vpop.f32.mrb[25].mxu1  ;;  %v1514_v13 = vpop.f32.mrb[25].mxu0 }
 0x3ef   :  { %1896 = vst.msk [vmem:[%s3855_s5 + $0x30] sm:$0xff] %vm1889_vm1, %v1863_v8  ;;  %v2804_v14 = vadd.f32 %v1514_v13, %v983_v12 }
 0x3f0   :  { %v1866_v15 = vadd.f32 %v2803_v11, %v1745_v32  ;;  %v1835_v13 = vpop.permute.xlu0 %1834 }
 0x3f1   :  { %v1865_v16 = vadd.f32 %v2804_v14, %v1740_v33  ;;  %v2440_v17 = vpop.f32.mrb[26].mxu1  ;;  %v2600_v18 = vpop.f32.mrb[26].mxu0 }
 0x3f2   :  { %1899 = vst.msk [vmem:[%s3855_s5 + $0x48] sm:$0xff] %vm1889_vm1, %v1866_v15  ;;  %v2805_v19 = vadd.f32 %v2600_v18, %v2440_v17  ;;  %v993_v20 = vpop.f32.mrb[27].mxu1  ;;  %v1524_v21 = vpop.f32.mrb[27].mxu0 }
 0x3f3   :  { %1898 = vst.msk [vmem:[%s3855_s5 + $0x40] sm:$0xff] %vm1889_vm1, %v1865_v16  ;;  %v2806_v23 = vadd.f32 %v1524_v21, %v993_v20 }
 0x3f4   :  { %v1868_v26 = vadd.f32 %v2805_v19, %v3692_v34 }
 0x3f5   :  { %v1867_v28 = vadd.f32 %v2806_v23, %v3694_v36  ;;  %v2443_v29 = vpop.f32.mrb[28].mxu1  ;;  %v2603_v31 = vpop.f32.mrb[28].mxu0 }
 0x3f6   :  { %1901 = vst.msk [vmem:[%s3855_s5 + $0x58] sm:$0xff] %vm1889_vm1, %v1868_v26  ;;  %v2807_v32 = vadd.f32 %v2603_v31, %v2443_v29  ;;  %v1003_v33 = vpop.f32.mrb[29].mxu1  ;;  %v1534_v42 = vpop.f32.mrb[29].mxu0 }
 0x3f7   :  { %1900 = vst.msk [vmem:[%s3855_s5 + $0x50] sm:$0xff] %vm1889_vm1, %v1867_v28  ;;  %v2808_v44 = vadd.f32 %v1534_v42, %v1003_v33  ;;  %v1845_v42 = vpop.permute.xlu0 %1844 }
 0x3f8   :  { %v1870_v34 = vadd.f32 %v2807_v32, %v3696_v37  ;;  %v1810_v37 = vpop.permute.xlu1 %1809 }
 0x3f9   :  { %v1869_v36 = vadd.f32 %v2808_v44, %v3698_v38  ;;  %v2446_v45 = vpop.f32.mrb[30].mxu1  ;;  %v2606_v46 = vpop.f32.mrb[30].mxu0 }
 0x3fa   :  { %1903 = vst.msk [vmem:[%s3855_s5 + $0x68] sm:$0xff] %vm1889_vm1, %v1870_v34  ;;  %v2809_v47 = vadd.f32 %v2606_v46, %v2446_v45  ;;  %v1013_v49 = vpop.f32.mrb[31].mxu1  ;;  %v1544_v22 = vpop.f32.mrb[31].mxu0 }
 0x3fb   :  { %1902 = vst.msk [vmem:[%s3855_s5 + $0x60] sm:$0xff] %vm1889_vm1, %v1869_v36  ;;  %v2810_v50 = vadd.f32 %v1544_v22, %v1013_v49 }
 0x3fc   :  { %v1872_v38 = vadd.f32 %v2809_v47, %v3700_v40 }
 0x3fd   :  { %v1871_v51 = vadd.f32 %v2810_v50, %v3702_v41  ;;  %v2449_v30 = vpop.f32.mrb[32].mxu1  ;;  %v2609_v53 = vpop.f32.mrb[32].mxu0 }
 0x3fe   :  { %1905 = vst.msk [vmem:[%s3855_s5 + $0x78] sm:$0xff] %vm1889_vm1, %v1872_v38  ;;  %v2811_v35 = vadd.f32 %v2609_v53, %v2449_v30  ;;  %v1023_v54 = vpop.f32.mrb[33].mxu1  ;;  %v1554_v43 = vpop.f32.mrb[33].mxu0 }
 0x3ff   :  { %1904 = vst.msk [vmem:[%s3855_s5 + $0x70] sm:$0xff] %vm1889_vm1, %v1871_v51  ;;  %v2812_v56 = vadd.f32 %v1554_v43, %v1023_v54  ;;  %v1855_v54 = vpop.permute.xlu0 %1854 }
 0x400   :  { %v1874_v40 = vadd.f32 %v2811_v35, %v3712_v39  ;;  %v1820_v39 = vpop.permute.xlu1 %1819 }
 0x401   :  { %v1873_v41 = vadd.f32 %v2812_v56, %v3714_v55  ;;  %v2452_v48 = vpop.f32.mrb[34].mxu1  ;;  %v2612_v57 = vpop.f32.mrb[34].mxu0 }
 0x402   :  { %1907 = vst.msk [vmem:[%s3855_s5 + $0x88] sm:$0xff] %vm1889_vm1, %v1874_v40  ;;  %v2813_v58 = vadd.f32 %v2612_v57, %v2452_v48  ;;  %v1033_v52 = vpop.f32.mrb[35].mxu1  ;;  %v1564_v59 = vpop.f32.mrb[35].mxu0 }
 0x403   :  { %1906 = vst.msk [vmem:[%s3855_s5 + $0x80] sm:$0xff] %vm1889_vm1, %v1873_v41  ;;  %v2814_v60 = vadd.f32 %v1564_v59, %v1033_v52 }
 0x404   :  { %v1876_v55 = vadd.f32 %v2813_v58, %v3732_v5  ;;  %v1830_v14 = vpop.permute.xlu1 %1829 }
 0x405   :  { %v1875_v62 = vadd.f32 %v2814_v60, %v3734_v6  ;;  %v2455_v63 = vpop.f32.mrb[36].mxu1  ;;  %v2615_v0 = vpop.f32.mrb[36].mxu0 }
 0x406   :  { %1909 = vst.msk [vmem:[%s3855_s5 + $0x98] sm:$0xff] %vm1889_vm1, %v1876_v55  ;;  %v2815_v1 = vadd.f32 %v2615_v0, %v2455_v63  ;;  %v1043_v2 = vpop.f32.mrb[37].mxu1  ;;  %v1574_v3 = vpop.f32.mrb[37].mxu0 }
 0x407   :  { %1908 = vst.msk [vmem:[%s3855_s5 + $0x90] sm:$0xff] %vm1889_vm1, %v1875_v62  ;;  %v2816_v4 = vadd.f32 %v1574_v3, %v1043_v2 }
 0x408   :  { %v1878_v7 = vadd.f32 %v2815_v1, %v1805_v24  ;;  %v1840_v44 = vpop.permute.xlu1 %1839 }
 0x409   :  { %v1877_v5 = vadd.f32 %v2816_v4, %v1800_v25  ;;  %v2458_v8 = vpop.f32.mrb[38].mxu1  ;;  %v2618_v6 = vpop.f32.mrb[38].mxu0 }
 0x40a   :  { %1911 = vst.msk [vmem:[%s3855_s5 + $0xa8] sm:$0xff] %vm1889_vm1, %v1878_v7  ;;  %v2817_v9 = vadd.f32 %v2618_v6, %v2458_v8  ;;  %v1053_v10 = vpop.f32.mrb[39].mxu1  ;;  %v1584_v11 = vpop.f32.mrb[39].mxu0 }
 0x40b   :  { %1910 = vst.msk [vmem:[%s3855_s5 + $0xa0] sm:$0xff] %vm1889_vm1, %v1877_v5  ;;  %v2818_v12 = vadd.f32 %v1584_v11, %v1053_v10 }
 0x40c   :  { %v1880_v15 = vadd.f32 %v2817_v9, %v1815_v27  ;;  %v1850_v56 = vpop.permute.xlu1 %1849 }
 0x40d   :  { %v1879_v16 = vadd.f32 %v2818_v12, %v1810_v37  ;;  %v2461_v17 = vpop.f32.mrb[40].mxu1  ;;  %v2621_v18 = vpop.f32.mrb[40].mxu0 }
 0x40e   :  { %1913 = vst.msk [vmem:[%s3855_s5 + $0xb8] sm:$0xff] %vm1889_vm1, %v1880_v15  ;;  %v2819_v19 = vadd.f32 %v2621_v18, %v2461_v17  ;;  %v1063_v20 = vpop.f32.mrb[41].mxu1  ;;  %v1594_v21 = vpop.f32.mrb[41].mxu0 }
 0x40f   :  { %1912 = vst.msk [vmem:[%s3855_s5 + $0xb0] sm:$0xff] %vm1889_vm1, %v1879_v16  ;;  %v2820_v23 = vadd.f32 %v1594_v21, %v1063_v20 }
 0x410   :  { %v1882_v24 = vadd.f32 %v2819_v19, %v1825_v61 }
 0x411   :  { %v1881_v25 = vadd.f32 %v2820_v23, %v1820_v39  ;;  %v2464_v26 = vpop.f32.mrb[42].mxu1  ;;  %v2624_v28 = vpop.f32.mrb[42].mxu0 }
 0x412   :  { %1915 = vst.msk [vmem:[%s3855_s5 + $0xc8] sm:$0xff] %vm1889_vm1, %v1882_v24  ;;  %v2821_v29 = vadd.f32 %v2624_v28, %v2464_v26  ;;  %v1073_v31 = vpop.f32.mrb[43].mxu1  ;;  %v1604_v32 = vpop.f32.mrb[43].mxu0 }
 0x413   :  { %1914 = vst.msk [vmem:[%s3855_s5 + $0xc0] sm:$0xff] %vm1889_vm1, %v1881_v25  ;;  %v2822_v33 = vadd.f32 %v1604_v32, %v1073_v31 }
 0x414   :  { %v1884_v34 = vadd.f32 %v2821_v29, %v1835_v13 }
 0x415   :  { %v1883_v36 = vadd.f32 %v2822_v33, %v1830_v14  ;;  %v2467_v45 = vpop.f32.mrb[44].mxu1  ;;  %v2627_v46 = vpop.f32.mrb[44].mxu0 }
 0x416   :  { %1917 = vst.msk [vmem:[%s3855_s5 + $0xd8] sm:$0xff] %vm1889_vm1, %v1884_v34  ;;  %v2823_v47 = vadd.f32 %v2627_v46, %v2467_v45  ;;  %v1083_v49 = vpop.f32.mrb[45].mxu1  ;;  %v1614_v22 = vpop.f32.mrb[45].mxu0 }
 0x417   :  { %1916 = vst.msk [vmem:[%s3855_s5 + $0xd0] sm:$0xff] %vm1889_vm1, %v1883_v36  ;;  %v2824_v50 = vadd.f32 %v1614_v22, %v1083_v49 }
 0x418   :  { %v1886_v27 = vadd.f32 %v2823_v47, %v1845_v42 }
 0x419   :  { %v1885_v37 = vadd.f32 %v2824_v50, %v1840_v44  ;;  %v2470_v38 = vpop.f32.mrb[46].mxu1  ;;  %v2630_v51 = vpop.f32.mrb[46].mxu0 }
 0x41a   :  { %1919 = vst.msk [vmem:[%s3855_s5 + $0xe8] sm:$0xff] %vm1889_vm1, %v1886_v27  ;;  %v2825_v30 = vadd.f32 %v2630_v51, %v2470_v38  ;;  %v1093_v53 = vpop.f32.mrb[47].mxu1  ;;  %v1624_v35 = vpop.f32.mrb[47].mxu0 }
 0x41b   :  { %1918 = vst.msk [vmem:[%s3855_s5 + $0xe0] sm:$0xff] %vm1889_vm1, %v1885_v37  ;;  %v2826_v43 = vadd.f32 %v1624_v35, %v1093_v53 }
 0x41c   :  { %v1888_v40 = vadd.f32 %v2825_v30, %v1855_v54 }
 0x41d   :  { %v1887_v41 = vadd.f32 %v2826_v43, %v1850_v56 }
 0x41e   :  { %1921 = vst.msk [vmem:[%s3855_s5 + $0xf8] sm:$0xff] %vm1889_vm1, %v1888_v40 }
 0x41f   :  { %1920 = vst.msk [vmem:[%s3855_s5 + $0xf0] sm:$0xff] %vm1889_vm1, %v1887_v41 }

</bundles_post_ra>
